<compile_context>
chip_gen: v5e
topology: v5e:2x2
jax: 0.10.0
libtpu: 0.0.40
codegen_flags: <defaults>
</compile_context>

<pallas_src>
import functools

import jax
import jax.numpy as jnp
from jax.experimental import pallas as pl
from jax.experimental.pallas import tpu as pltpu


def _round_up(x, m):
    return (x + m - 1) // m * m


# ----------------------------------------------------------------------------
# Generic fused matmul (stem / expand / head 1x1 convs):  act(x @ w + b)
# ----------------------------------------------------------------------------


def _mm_kernel(x_ref, w_ref, b_ref, o_ref, *, act):
    """One M tile; K and N are single full blocks (bf16 operands, f32 accumulate)."""
    r = jnp.dot(x_ref[...], w_ref[...], preferred_element_type=jnp.float32) + b_ref[...]
    if act == "swish":
        r = r * jax.nn.sigmoid(r)
    elif act == "sigmoid":
        r = jax.nn.sigmoid(r)
    elif act == "relu":
        r = jnp.maximum(r, 0.0)
    o_ref[...] = r.astype(o_ref.dtype)


_MM_KERNELS = {a: functools.partial(_mm_kernel, act=a)
               for a in ("none", "swish", "sigmoid", "relu")}


def _pick_tm(M, cap=512):
    """M tile: full M when small, else largest nice divisor, else pad to 256s."""
    if M <= cap:
        return M, M
    for mult in (16, 8):
        for d in range(cap, mult - 1, -1):
            if d % mult == 0 and M % d == 0:
                return d, M
    return 256, _round_up(M, 256)


@functools.partial(jax.jit, static_argnames=("act",))
def pallas_matmul(x, w, b, act="none"):
    """out = act(x @ w + b).  x: (M, K) bf16, w: (Kp, N) bf16 (K pre-padded to a
    multiple of 16 at init), b: (1, N) f32.  Single K / N block, M tiled."""
    M, K = x.shape
    Kp, N = w.shape
    if Kp != K:                                   # small K-pad (e.g. 27->32, 24->32)
        x = jnp.pad(x, ((0, 0), (0, Kp - K)))
    tm, Mp = _pick_tm(M)
    if Mp != M:
        x = jnp.pad(x, ((0, Mp - M), (0, 0)))
    out = pl.pallas_call(
        _MM_KERNELS[act],
        out_shape=jax.ShapeDtypeStruct((Mp, N), jnp.bfloat16),
        grid=(Mp // tm,),
        in_specs=[
            pl.BlockSpec((tm, Kp), lambda i: (i, 0)),
            pl.BlockSpec((Kp, N), lambda i: (0, 0)),
            pl.BlockSpec((1, N), lambda i: (0, 0)),
        ],
        out_specs=pl.BlockSpec((tm, N), lambda i: (i, 0)),
        compiler_params=pltpu.CompilerParams(dimension_semantics=("parallel",)),
    )(x, w, b)
    return out[:M] if Mp != M else out


# ----------------------------------------------------------------------------
# Depthwise conv: in-kernel tap extraction from halo'd NHWC tiles (+BN +swish)
# also emits per-tile channel sums for the SE global-average-pool.
# ----------------------------------------------------------------------------


def _dw_kernel(x_ref, w_ref, b_ref, o_ref, ps_ref, *, k, s, th, wo):
    """x_ref : (1, s*s, th+dK, Cq, C) f32   w_ref: (k*k, C) f32   b_ref: (1, C) f32
       o_ref : (1, th, wo, C) bf16          ps_ref: (1, 1, C) f32 (tile channel sum)
    Taps are read as shifted, stride-1 slices of the phase-decomposed halo block.
    # TODO(synk): for C < 128 lanes are under-filled; packing several spatial
    # positions per vreg would raise VPU lane utilization on early layers.
    """
    c_ch = x_ref.shape[-1]
    acc = jnp.zeros((th, wo, c_ch), jnp.float32)
    for kh in range(k):
        for kw in range(k):
            p = (kh % s) * s + (kw % s)
            r, c = kh // s, kw // s
            tap = x_ref[0, p, r:r + th, c:c + wo, :]
            acc = acc + tap * w_ref[kh * k + kw, :]
    acc = acc + b_ref[...]
    act = acc * jax.nn.sigmoid(acc)                               # swish
    o_ref[...] = act[None].astype(o_ref.dtype)
    ps_ref[...] = jnp.sum(act, axis=(0, 1), keepdims=True)


def _same_pad(size, k, s):
    out = -(-size // s)
    pad = max((out - 1) * s + k - size, 0)
    return pad // 2, pad - pad // 2, out


def _choose_th(Ho, Wo, Cq, C, SS, dK, budget=3 << 20):
    """Largest H tile (divisor of Ho) whose double-buffered window + working set
    stays well inside the 16 MiB v5e scoped-VMEM default."""
    best = 1
    for d in range(1, Ho + 1):
        if Ho % d:
            continue
        blk = SS * (d + dK) * Cq * C * 4            # f32 input window block
        work = d * Wo * C * (4 + 4 + 2)             # acc + tap + bf16 output tile
        if 2 * blk + work <= budget:
            best = d
    return best


@functools.partial(jax.jit, static_argnames=("k", "s"))
def pallas_dwconv_swish(x, w, b, k, s):
    """Depthwise kxk, TF-SAME, stride s conv + folded BN + swish.
    x: (B, H, W, C) bf16 -> (y (B, Ho, Wo, C) bf16, psum (B, n_t, C) f32)."""
    B, H, W, C = x.shape
    ph0, _, Ho = _same_pad(H, k, s)
    pw0, _, Wo = _same_pad(W, k, s)
    dK = (k - 1) // s
    Rq, Cq = Ho + dK, Wo + dK
    # SAME top/left pad; bottom/right padded out to s*Rq / s*Cq (the extra rows
    # beyond SAME padding are never read by any valid tap). dw math is f32 (v5e VPU).
    xp = jnp.pad(x.astype(jnp.float32),
                 ((0, 0), (ph0, s * Rq - H - ph0), (pw0, s * Cq - W - pw0), (0, 0)))
    if s == 1:
        xq = xp[:, None]                                          # (B, 1, Rq, Cq, C)
    else:
        # Phase decomposition: xq[b, ph*s+pw, r, c] = xp[b, r*s+ph, c*s+pw]
        xq = xp.reshape(B, Rq, s, Cq, s, C).transpose(0, 2, 4, 1, 3, 5)
        xq = xq.reshape(B, s * s, Rq, Cq, C)
    SS = s * s
    th = _choose_th(Ho, Wo, Cq, C, SS, dK)
    n_t = Ho // th
    Lr = th + dK
    if n_t == 1:
        win = xq                                                  # (B, SS, Rq, Cq, C)
    else:                                                         # halo'd H tiles
        win = jnp.stack([xq[:, :, t * th:t * th + Lr] for t in range(n_t)], axis=1)
        win = win.reshape(B * n_t, SS, Lr, Cq, C)
    kern = functools.partial(_dw_kernel, k=k, s=s, th=th, wo=Wo)
    y, psum = pl.pallas_call(
        kern,
        out_shape=(jax.ShapeDtypeStruct((B * n_t, th, Wo, C), jnp.bfloat16),
                   jax.ShapeDtypeStruct((B * n_t, 1, C), jnp.float32)),
        grid=(B * n_t,),
        in_specs=[
            pl.BlockSpec((1, SS, Lr, Cq, C), lambda g: (g, 0, 0, 0, 0)),
            pl.BlockSpec((k * k, C), lambda g: (0, 0)),
            pl.BlockSpec((1, C), lambda g: (0, 0)),
        ],
        out_specs=[
            pl.BlockSpec((1, th, Wo, C), lambda g: (g, 0, 0, 0)),
            pl.BlockSpec((1, 1, C), lambda g: (g, 0, 0)),
        ],
        compiler_params=pltpu.CompilerParams(dimension_semantics=("parallel",)),
    )(win, w, b)
    return y.reshape(B, Ho, Wo, C), psum.reshape(B, n_t, C)


# ----------------------------------------------------------------------------
# MBConv squeeze-excite gate (pool partial sums -> reduce -> swish -> expand ->
# sigmoid). Scaling itself is fused into the projection matmul below.
# ----------------------------------------------------------------------------


def _se_gate_kernel(ps_ref, w1_ref, b1_ref, w2_ref, b2_ref, o_ref, *, inv_hw):
    pooled = jnp.sum(ps_ref[...], axis=1) * inv_hw                # (B, C) global avg pool
    h = jnp.dot(pooled, w1_ref[...], preferred_element_type=jnp.float32) + b1_ref[...]
    h = h * jax.nn.sigmoid(h)                                     # swish
    g = jax.nn.sigmoid(
        jnp.dot(h, w2_ref[...], preferred_element_type=jnp.float32) + b2_ref[...])
    o_ref[...] = g[:, None, :]


@functools.partial(jax.jit, static_argnames=("hw",))
def pallas_se_gate(psum, w1, b1, w2, b2, hw):
    B, n_t, C = psum.shape
    Cr = w1.shape[1]
    kern = functools.partial(_se_gate_kernel, inv_hw=1.0 / float(hw))
    return pl.pallas_call(
        kern,
        out_shape=jax.ShapeDtypeStruct((B, 1, C), jnp.float32),
        grid=(1,),
        in_specs=[
            pl.BlockSpec((B, n_t, C), lambda i: (0, 0, 0)),
            pl.BlockSpec((C, Cr), lambda i: (0, 0)),
            pl.BlockSpec((1, Cr), lambda i: (0, 0)),
            pl.BlockSpec((Cr, C), lambda i: (0, 0)),
            pl.BlockSpec((1, C), lambda i: (0, 0)),
        ],
        out_specs=pl.BlockSpec((B, 1, C), lambda i: (0, 0, 0)),
    )(psum, w1, b1, w2, b2)


# ----------------------------------------------------------------------------
# Fused SE-scale + projection 1x1 conv (+folded BN) (+ residual add)
# ----------------------------------------------------------------------------


def _proj_kernel(x_ref, g_ref, w_ref, b_ref, o_ref):
    xs = (x_ref[0].astype(jnp.float32) * g_ref[0]).astype(jnp.bfloat16)
    r = jnp.dot(xs, w_ref[...], preferred_element_type=jnp.float32) + b_ref[...]
    o_ref[...] = r[None].astype(o_ref.dtype)


def _proj_res_kernel(x_ref, g_ref, w_ref, b_ref, r_ref, o_ref):
    xs = (x_ref[0].astype(jnp.float32) * g_ref[0]).astype(jnp.bfloat16)
    r = jnp.dot(xs, w_ref[...], preferred_element_type=jnp.float32) + b_ref[...]
    r = r + r_ref[0].astype(jnp.float32)        # TODO(synk): drop_connect = identity (eval)
    o_ref[...] = r[None].astype(o_ref.dtype)


def _pick_tm_div(M, cap=512):
    if M <= cap:
        return M
    for mult in (16, 8):
        for d in range(cap, mult - 1, -1):
            if d % mult == 0 and M % d == 0:
                return d
    return M    # TODO(synk): pathological HW with no nice divisor -> one full block


@jax.jit
def pallas_proj(x, gate, w, b, res):
    """out = (x * gate) @ w + b (+ res).  x: (B, HW, K) bf16; gate: (B, 1, K) f32;
    w: (K, N) bf16; b: (1, N) f32; res: (B, HW, N) bf16 or None."""
    B, HW, K = x.shape
    N = w.shape[1]
    tm = _pick_tm_div(HW)
    in_specs = [
        pl.BlockSpec((1, tm, K), lambda bb, i: (bb, i, 0)),
        pl.BlockSpec((1, 1, K), lambda bb, i: (bb, 0, 0)),
        pl.BlockSpec((K, N), lambda bb, i: (0, 0)),
        pl.BlockSpec((1, N), lambda bb, i: (0, 0)),
    ]
    args = [x, gate, w, b]
    if res is None:
        kern = _proj_kernel
    else:
        kern = _proj_res_kernel
        in_specs.append(pl.BlockSpec((1, tm, N), lambda bb, i: (bb, i, 0)))
        args.append(res)
    return pl.pallas_call(
        kern,
        out_shape=jax.ShapeDtypeStruct((B, HW, N), jnp.bfloat16),
        grid=(B, HW // tm),
        in_specs=in_specs,
        out_specs=pl.BlockSpec((1, tm, N), lambda bb, i: (bb, i, 0)),
        compiler_params=pltpu.CompilerParams(
            dimension_semantics=("parallel", "parallel")),
    )(*args)


# ----------------------------------------------------------------------------
# GeM pooling and classifier head
# ----------------------------------------------------------------------------


def _gem_kernel(x_ref, o_ref, *, p, eps):
    """GeM pooling: (mean over HW of clamp(x, eps)^p)^(1/p)."""
    x = jnp.maximum(x_ref[...].astype(jnp.float32), eps)
    xp = jnp.exp(p * jnp.log(x))                      # x ** p  (EUP exp/log)
    m = jnp.mean(xp, axis=1)
    o_ref[...] = jnp.exp(jnp.log(m) / p)              # m ** (1/p)


_GEM_KERNEL = functools.partial(_gem_kernel, p=3.0, eps=1e-6)


@jax.jit
def pallas_gem(x):
    B, HW, C = x.shape
    return pl.pallas_call(
        _GEM_KERNEL,
        out_shape=jax.ShapeDtypeStruct((B, C), jnp.float32),
        grid=(B,),
        in_specs=[pl.BlockSpec((1, HW, C), lambda i: (i, 0, 0))],
        out_specs=pl.BlockSpec((1, C), lambda i: (i, 0)),
        compiler_params=pltpu.CompilerParams(dimension_semantics=("parallel",)),
    )(x)


def _head_kernel(x_ref, w1_ref, b1_ref, w2_ref, b2_ref, wf_ref, bf_ref, o_ref):
    """Flatten -> SEBlock (Linear/ReLU/Linear/Sigmoid gate) -> Dropout(id) -> Linear."""
    x = x_ref[...]
    h = jnp.maximum(
        jnp.dot(x, w1_ref[...], preferred_element_type=jnp.float32) + b1_ref[...], 0.0)
    g = jax.nn.sigmoid(
        jnp.dot(h, w2_ref[...], preferred_element_type=jnp.float32) + b2_ref[...])
    x = x * g
    # TODO(synk): nn.Dropout() is identity in eval mode; no stochastic path here.
    o_ref[...] = jnp.dot(x, wf_ref[...], preferred_element_type=jnp.float32) + bf_ref[...]


@jax.jit
def pallas_head(x, w1, b1, w2, b2, wf, bf):
    B, C = x.shape
    Cr = w1.shape[1]
    O = wf.shape[1]
    return pl.pallas_call(
        _head_kernel,
        out_shape=jax.ShapeDtypeStruct((B, O), jnp.float32),
        grid=(1,),
        in_specs=[
            pl.BlockSpec((B, C), lambda i: (0, 0)),
            pl.BlockSpec((C, Cr), lambda i: (0, 0)),
            pl.BlockSpec((1, Cr), lambda i: (0, 0)),
            pl.BlockSpec((Cr, C), lambda i: (0, 0)),
            pl.BlockSpec((1, C), lambda i: (0, 0)),
            pl.BlockSpec((C, O), lambda i: (0, 0)),
            pl.BlockSpec((1, O), lambda i: (0, 0)),
        ],
        out_specs=pl.BlockSpec((B, O), lambda i: (0, 0)),
    )(x, w1, b1, w2, b2, wf, bf)


# ----------------------------------------------------------------------------
# Glue (plain JAX layout plumbing)
# ----------------------------------------------------------------------------


def conv2d_same(x, w, b, k, s, act):
    """Full conv via light im2col (taps stacked on a trailing axis; no 5-D
    transpose) + Pallas matmul.  w: (k*k*Cin [K-padded], Cout) bf16, (kh,kw,cin)."""
    B, H, W, C = x.shape
    ph0, ph1, Ho = _same_pad(H, k, s)
    pw0, pw1, Wo = _same_pad(W, k, s)
    xp = jnp.pad(x, ((0, 0), (ph0, ph1), (pw0, pw1), (0, 0)))
    taps = [xp[:, kh:kh + s * (Ho - 1) + 1:s, kw:kw + s * (Wo - 1) + 1:s, :]
            for kh in range(k) for kw in range(k)]
    cols = jnp.stack(taps, axis=3).reshape(B * Ho * Wo, k * k * C)
    out = pallas_matmul(cols, w, b, act=act)
    return out.reshape(B, Ho, Wo, -1)


def conv1x1(x, w, b, act):
    B, H, W, C = x.shape
    out = pallas_matmul(x.reshape(B * H * W, C), w, b, act=act)
    return out.reshape(B, H, W, -1)


def mbconv(x, p):
    B, H, W, cin = x.shape
    inp = x
    if p["exp_w"] is not None:
        x = conv1x1(x, p["exp_w"], p["exp_b"], act="swish")       # expand + BN + swish
    y, psum = pallas_dwconv_swish(x, p["dw_w"], p["dw_b"], k=p["k"], s=p["s"])
    _, Ho, Wo, cexp = y.shape
    gate = pallas_se_gate(psum, p["se_rw"], p["se_rb"], p["se_ew"], p["se_eb"],
                          hw=Ho * Wo)                             # (B, 1, cexp)
    cout = p["proj_w"].shape[1]
    res = None
    if p["s"] == 1 and cin == cout:
        res = inp.reshape(B, H * W, cin)
    out = pallas_proj(y.reshape(B, Ho * Wo, cexp), gate,
                      p["proj_w"], p["proj_b"], res)              # SE-scale+proj(+res) fused
    return out.reshape(B, Ho, Wo, cout)


def custom_efficientnet_forward(params, x_nchw):
    # layout: NCHW (PyTorch) -> NHWC internally (channels on the TPU lane axis).
    x = jnp.transpose(x_nchw, (0, 2, 3, 1)).astype(jnp.bfloat16)
    x = conv2d_same(x, params["stem_w"], params["stem_b"], k=3, s=2, act="swish")
    for p in params["blocks"]:
        x = mbconv(x, p)
    x = conv1x1(x, params["head_w"], params["head_b"], act="swish")
    B, H, W, C = x.shape
    feat = pallas_gem(x.reshape(B, H * W, C))                     # GeM pool -> (B, 1280)
    out = pallas_head(feat,
                      params["fc_se_w1"], params["fc_se_b1"],
                      params["fc_se_w2"], params["fc_se_b2"],
                      params["fc_w"], params["fc_b"])
    return out                                                    # (B, out_ch)


# ----------------------------------------------------------------------------
# Deterministic parameter initialization (efficientnet-b0 shapes, eval mode)
# ----------------------------------------------------------------------------

BLOCK_ARGS = [
    # (kernel, stride, expand_ratio, in_c, out_c, repeats)  -- efficientnet-b0
    (3, 1, 1, 32, 16, 1),
    (3, 2, 6, 16, 24, 2),
    (5, 2, 6, 24, 40, 2),
    (3, 2, 6, 40, 80, 3),
    (5, 1, 6, 80, 112, 3),
    (5, 2, 6, 112, 192, 4),
    (3, 1, 6, 192, 320, 1),
]
STEM_C = 32
HEAD_C = 1280        # self.net._fc.in_features for b0
BN_EPS = 1e-3
SE_RATIO = 0.25
FC_SE_R = 16         # TODO(synk): SEBlock class not provided; assume Linear(c,c//16)->ReLU->Linear->Sigmoid gate.


def _fold_bn(w, gamma, beta, mean, var, eps=BN_EPS):
    scale = gamma / jnp.sqrt(var + eps)
    return w * scale, beta - mean * scale


def init_params(key, in_ch=3, out_ch=1):
    key_iter = iter(jax.random.split(key, 1024))
    nk = lambda: next(key_iter)

    def dense(cin, cout):
        return jax.random.normal(nk(), (cin, cout), jnp.float32) / jnp.sqrt(float(cin))

    def bn(c):
        return (1.0 + 0.1 * jax.random.normal(nk(), (c,), jnp.float32),
                0.1 * jax.random.normal(nk(), (c,), jnp.float32),
                0.1 * jax.random.normal(nk(), (c,), jnp.float32),
                1.0 + 0.1 * jax.random.uniform(nk(), (c,), jnp.float32))

    def mm_weight(w, bn_stats):
        """Fold BN, pad K to a multiple of 16, cast weight to bf16 (done once at
        init, not per forward). Bias kept f32, pre-shaped (1, N)."""
        w, b = _fold_bn(w, *bn_stats)
        kpad = _round_up(w.shape[0], 16) - w.shape[0]
        if kpad:
            w = jnp.pad(w, ((0, kpad), (0, 0)))
        return w.astype(jnp.bfloat16), b.reshape(1, -1)

    params = {}
    # Stem conv (3x3 stride 2, bias=False) + BN; replicate weights if in_ch != 3.
    w = jax.random.normal(nk(), (3, 3, 3, STEM_C), jnp.float32) / jnp.sqrt(27.0)
    if in_ch != 3:
        w = jnp.concatenate([w] * (in_ch // 3), axis=2)
    w = w.reshape(3 * 3 * in_ch, STEM_C)
    params["stem_w"], params["stem_b"] = mm_weight(w, bn(STEM_C))

    blocks = []
    for (k, s, e, ci, co, r) in BLOCK_ARGS:
        for rep in range(r):
            cin = ci if rep == 0 else co
            stride = s if rep == 0 else 1
            cexp = cin * e
            p = {"k": k, "s": stride}
            if e != 1:
                p["exp_w"], p["exp_b"] = mm_weight(dense(cin, cexp), bn(cexp))
            else:
                p["exp_w"], p["exp_b"] = None, None
            dw = jax.random.normal(nk(), (k * k, cexp), jnp.float32) / float(k)
            dww, dwb = _fold_bn(dw, *bn(cexp))
            p["dw_w"], p["dw_b"] = dww, dwb.reshape(1, -1)        # f32 (VPU path)
            se_c = max(1, int(cin * SE_RATIO))
            p["se_rw"] = dense(cexp, se_c)
            p["se_rb"] = (0.01 * jax.random.normal(nk(), (se_c,), jnp.float32)).reshape(1, -1)
            p["se_ew"] = dense(se_c, cexp)
            p["se_eb"] = (0.01 * jax.random.normal(nk(), (cexp,), jnp.float32)).reshape(1, -1)
            p["proj_w"], p["proj_b"] = mm_weight(dense(cexp, co), bn(co))
            blocks.append(p)
    params["blocks"] = blocks

    params["head_w"], params["head_b"] = mm_weight(dense(320, HEAD_C), bn(HEAD_C))

    hid = HEAD_C // FC_SE_R
    params["fc_se_w1"] = dense(HEAD_C, hid)
    params["fc_se_b1"] = (0.01 * jax.random.normal(nk(), (hid,), jnp.float32)).reshape(1, -1)
    params["fc_se_w2"] = dense(hid, HEAD_C)
    params["fc_se_b2"] = (0.01 * jax.random.normal(nk(), (HEAD_C,), jnp.float32)).reshape(1, -1)
    params["fc_w"] = dense(HEAD_C, out_ch)
    params["fc_b"] = (0.01 * jax.random.normal(nk(), (out_ch,), jnp.float32)).reshape(1, -1)
    return params


# ----------------------------------------------------------------------------

if __name__ == "__main__":
    key = jax.random.PRNGKey(0)
    pkey, xkey = jax.random.split(key)
    params = init_params(pkey, in_ch=3, out_ch=1)
    # Small deterministic input, NCHW as the PyTorch module expects.
    x = jax.random.normal(xkey, (2, 3, 32, 32), jnp.float32)
    out = custom_efficientnet_forward(params, x)
    out = jax.block_until_ready(out)
    assert out.shape == (2, 1), out.shape
    assert bool(jnp.all(jnp.isfinite(out)))
    print("KERNEL_OK")
</pallas_src>

<mosaic_0001>
module attributes {stable_mosaic.version = 11 : i64} {
  func.func @_mm_kernel(%arg0: i32, %arg1: memref<512x32xbf16, #tpu.memory_space<vmem>>, %arg2: memref<32x32xbf16, #tpu.memory_space<vmem>>, %arg3: memref<1x32xf32, #tpu.memory_space<vmem>>, %arg4: memref<512x32xbf16, #tpu.memory_space<vmem>>) attributes {dimension_semantics = [#tpu.dimension_semantics<parallel>], iteration_bounds = array<i64: 1>, scalar_prefetch = 0 : i64, scratch_operands = 0 : i64, tpu.core_type = #tpu.core_type<tc>, window_params = [{transform_indices = @transform_0, window_bounds = array<i64: 512, 32>}, {pipeline_mode = #tpu.pipeline_mode<synchronous>, transform_indices = @transform_1, window_bounds = array<i64: 32, 32>}, {pipeline_mode = #tpu.pipeline_mode<synchronous>, transform_indices = @transform_2, window_bounds = array<i64: 1, 32>}, {transform_indices = @transform_3, window_bounds = array<i64: 512, 32>}]} {
    %c0 = arith.constant 0 : index
    %c0_0 = arith.constant 0 : index
    %0 = vector.load %arg1[%c0, %c0_0] : memref<512x32xbf16, #tpu.memory_space<vmem>>, vector<512x32xbf16>
    %c0_1 = arith.constant 0 : index
    %c0_2 = arith.constant 0 : index
    %1 = vector.load %arg2[%c0_1, %c0_2] : memref<32x32xbf16, #tpu.memory_space<vmem>>, vector<32x32xbf16>
    %cst = arith.constant dense<0.000000e+00> : vector<512x32xf32>
    %2 = tpu.matmul %0, %1, %cst {dimension_numbers = #tpu.dot_dimension_numbers<[1], [0], [0], [1], [0, 0, 1, 1], [], []>} : vector<512x32xbf16>, vector<32x32xbf16>, vector<512x32xf32> -> vector<512x32xf32>
    %c0_3 = arith.constant 0 : index
    %c0_4 = arith.constant 0 : index
    %3 = vector.load %arg3[%c0_3, %c0_4] : memref<1x32xf32, #tpu.memory_space<vmem>>, vector<1x32xf32>
    %4 = vector.broadcast %3 : vector<1x32xf32> to vector<512x32xf32>
    %5 = arith.addf %2, %4 : vector<512x32xf32>
    %6 = arith.negf %5 : vector<512x32xf32>
    %7 = math.exp %6 : vector<512x32xf32>
    %cst_5 = arith.constant 1.000000e+00 : f32
    %8 = vector.broadcast %cst_5 : f32 to vector<512x32xf32>
    %9 = arith.addf %8, %7 : vector<512x32xf32>
    %10 = arith.divf %8, %9 : vector<512x32xf32>
    %11 = arith.mulf %5, %10 : vector<512x32xf32>
    %12 = arith.truncf %11 : vector<512x32xf32> to vector<512x32xbf16>
    %c0_6 = arith.constant 0 : index
    %c0_7 = arith.constant 0 : index
    %13 = vector.load %arg4[%c0_6, %c0_7] : memref<512x32xbf16, #tpu.memory_space<vmem>>, vector<512x32xbf16>
    tpu.vector_store %arg4[%c0_6, %c0_7], %12 {strides = array<i32>} : memref<512x32xbf16, #tpu.memory_space<vmem>>, vector<512x32xbf16>,
    return
  }
  func.func @transform_0(%arg0: i32) -> (i32, i32) {
    %c0_i32 = arith.constant 0 : i32
    %c0_i32_0 = arith.constant 0 : i32
    return %arg0, %c0_i32 : i32, i32
  }
  func.func @transform_1(%arg0: i32) -> (i32, i32) {
    %c0_i32 = arith.constant 0 : i32
    %c0_i32_0 = arith.constant 0 : i32
    %c0_i32_1 = arith.constant 0 : i32
    return %c0_i32, %c0_i32_0 : i32, i32
  }
  func.func @transform_2(%arg0: i32) -> (i32, i32) {
    %c0_i32 = arith.constant 0 : i32
    %c0_i32_0 = arith.constant 0 : i32
    %c0_i32_1 = arith.constant 0 : i32
    return %c0_i32, %c0_i32_0 : i32, i32
  }
  func.func @transform_3(%arg0: i32) -> (i32, i32) {
    %c0_i32 = arith.constant 0 : i32
    %c0_i32_0 = arith.constant 0 : i32
    return %arg0, %c0_i32 : i32, i32
  }
}

</mosaic_0001>

<bundles_post_ra>
// kernel: pallas_matmul.1
= control target key start
LH: loop header
LB: loop body
LE: loop exit
PB: predicated region body
PF: predicated region fallthrough
CT: control target
= control target key end

     0   :  { %vm259_vm0 = vcmask 261120   ;;  %vm1869_vm6 = vcmask 257024   ;;  %s4105_s1 = inlined_call_operand.vmem [shape: bf16[32,32], index: 1, kind: input, shape index: {}]   ;;  %s4106_s0 = inlined_call_operand.vmem [shape: bf16[512,32], index: 0, kind: input, shape index: {}]   ;;  %s4107_s2 = inlined_call_operand.vmem [shape: f32[1,32], index: 2, kind: input, shape index: {}]   ;;  %s4108_s3 = inlined_call_operand.vmem [shape: bf16[512,32], index: 3, kind: output, shape index: {}]  }
   0x1   :  { %v2203_v0 = vld [vmem:[%s4105_s1 + $0x8] sm:$0xff]  ;;  %v2202_v1 = vld [vmem:[%s4105_s1] sm:$0xff]  ;;  %v2172_v10 = vld [vmem:[%s4106_s0 + $0x10] sm:$0xff] }
   0x2   :  { %362 = vmatpush.bf16.msra.mxu0 %v2203_v0  ;;  %2204 = vmatpush.bf16.msra.mxu1 %v2203_v0  ;;  %v2170_v2 = vld [vmem:[%s4106_s0] sm:$0xff]  ;;  %v2171_v6 = vld [vmem:[%s4106_s0 + $0x8] sm:$0xff]  ;;  %v2180_v11 = vld [vmem:[%s4106_s0 + $0x50] sm:$0xff] }
   0x3   :  { %2205 = vmatpush.bf16.msra.mxu2 %v2203_v0  ;;  %2206 = vmatpush.bf16.msra.mxu3 %v2203_v0  ;;  %v2178_v3 = vld [vmem:[%s4106_s0 + $0x40] sm:$0xff]  ;;  %v2179_v7 = vld [vmem:[%s4106_s0 + $0x48] sm:$0xff]  ;;  %v2188_v12 = vld [vmem:[%s4106_s0 + $0x90] sm:$0xff] }
   0x4   :  { %v2186_v4 = vld [vmem:[%s4106_s0 + $0x80] sm:$0xff]  ;;  %v2187_v8 = vld [vmem:[%s4106_s0 + $0x88] sm:$0xff]  ;;  %v2196_v13 = vld [vmem:[%s4106_s0 + $0xd0] sm:$0xff] }
   0x5   :  { %v2194_v5 = vld [vmem:[%s4106_s0 + $0xc0] sm:$0xff]  ;;  %v2195_v9 = vld [vmem:[%s4106_s0 + $0xc8] sm:$0xff]  ;;  %v2173_v14 = vld [vmem:[%s4106_s0 + $0x18] sm:$0xff] }
   0x6   :  { %363 = vmatpush.bf16.msra.mxu0 %v2202_v1  ;;  %2207 = vmatpush.bf16.msra.mxu1 %v2202_v1  ;;  %v2181_v15 = vld [vmem:[%s4106_s0 + $0x58] sm:$0xff]  ;;  %v2174_v18 = vld [vmem:[%s4106_s0 + $0x20] sm:$0xff]  ;;  %v2175_v22 = vld [vmem:[%s4106_s0 + $0x28] sm:$0xff] }
   0x7   :  { %2208 = vmatpush.bf16.msra.mxu2 %v2202_v1  ;;  %2209 = vmatpush.bf16.msra.mxu3 %v2202_v1  ;;  %v2189_v16 = vld [vmem:[%s4106_s0 + $0x98] sm:$0xff]  ;;  %v2182_v19 = vld [vmem:[%s4106_s0 + $0x60] sm:$0xff]  ;;  %v2183_v23 = vld [vmem:[%s4106_s0 + $0x68] sm:$0xff] }
   0x8   :  { %v2197_v17 = vld [vmem:[%s4106_s0 + $0xd8] sm:$0xff]  ;;  %v2190_v20 = vld [vmem:[%s4106_s0 + $0xa0] sm:$0xff]  ;;  %v2191_v24 = vld [vmem:[%s4106_s0 + $0xa8] sm:$0xff] }
   0x9   :  { %2074 = vmatmul.msk.bf16.vlgmr.msra.gmra.mxu0 %vm259_vm0, %v2170_v2  ;;  %2082 = vmatmul.msk.bf16.vlgmr.msra.gmra.mxu1 %vm259_vm0, %v2178_v3  ;;  %v2198_v21 = vld [vmem:[%s4106_s0 + $0xe0] sm:$0xff]  ;;  %v2199_v25 = vld [vmem:[%s4106_s0 + $0xe8] sm:$0xff]  ;;  %v2176_v26 = vld [vmem:[%s4106_s0 + $0x30] sm:$0xff] }
   0xa   :  { %2090 = vmatmul.msk.bf16.vlgmr.msra.gmra.mxu2 %vm259_vm0, %v2186_v4  ;;  %2098 = vmatmul.msk.bf16.vlgmr.msra.gmra.mxu3 %vm259_vm0, %v2194_v5  ;;  %v2184_v27 = vld [vmem:[%s4106_s0 + $0x70] sm:$0xff]  ;;  %v2177_v30 = vld [vmem:[%s4106_s0 + $0x38] sm:$0xff]  ;;  %v2626_v34 = vld [vmem:[%s4107_s2] ss:$0 sm:$0xff] }
   0xb   :  { %v2192_v28 = vld [vmem:[%s4106_s0 + $0xb0] sm:$0xff]  ;;  %v2185_v31 = vld [vmem:[%s4106_s0 + $0x78] sm:$0xff] }
   0xc   :  { %v2200_v29 = vld [vmem:[%s4106_s0 + $0xf0] sm:$0xff]  ;;  %v2193_v32 = vld [vmem:[%s4106_s0 + $0xb8] sm:$0xff] }
   0xd   :  { %v2201_v33 = vld [vmem:[%s4106_s0 + $0xf8] sm:$0xff] }
  0x19   :  { %2075 = vmatmul.msk.bf16.gmra.mxu0 %vm259_vm0, %v2171_v6  ;;  %2083 = vmatmul.msk.bf16.gmra.mxu1 %vm259_vm0, %v2179_v7 }
  0x1a   :  { %2091 = vmatmul.msk.bf16.gmra.mxu2 %vm259_vm0, %v2187_v8  ;;  %2099 = vmatmul.msk.bf16.gmra.mxu3 %vm259_vm0, %v2195_v9 }
  0x29   :  { %2076 = vmatmul.msk.bf16.gmra.mxu0 %vm259_vm0, %v2172_v10  ;;  %2084 = vmatmul.msk.bf16.gmra.mxu1 %vm259_vm0, %v2180_v11 }
  0x2a   :  { %2092 = vmatmul.msk.bf16.gmra.mxu2 %vm259_vm0, %v2188_v12  ;;  %2100 = vmatmul.msk.bf16.gmra.mxu3 %vm259_vm0, %v2196_v13 }
  0x39   :  { %2077 = vmatmul.msk.bf16.gmra.mxu0 %vm259_vm0, %v2173_v14  ;;  %2085 = vmatmul.msk.bf16.gmra.mxu1 %vm259_vm0, %v2181_v15 }
  0x3a   :  { %2093 = vmatmul.msk.bf16.gmra.mxu2 %vm259_vm0, %v2189_v16  ;;  %2101 = vmatmul.msk.bf16.gmra.mxu3 %vm259_vm0, %v2197_v17 }
  0x49   :  { %2078 = vmatmul.msk.bf16.gmra.mxu0 %vm259_vm0, %v2174_v18  ;;  %2086 = vmatmul.msk.bf16.gmra.mxu1 %vm259_vm0, %v2182_v19 }
  0x4a   :  { %2094 = vmatmul.msk.bf16.gmra.mxu2 %vm259_vm0, %v2190_v20  ;;  %2102 = vmatmul.msk.bf16.gmra.mxu3 %vm259_vm0, %v2198_v21 }
  0x59   :  { %2079 = vmatmul.msk.bf16.gmra.mxu0 %vm259_vm0, %v2175_v22  ;;  %2087 = vmatmul.msk.bf16.gmra.mxu1 %vm259_vm0, %v2183_v23 }
  0x5a   :  { %2095 = vmatmul.msk.bf16.gmra.mxu2 %vm259_vm0, %v2191_v24  ;;  %2103 = vmatmul.msk.bf16.gmra.mxu3 %vm259_vm0, %v2199_v25 }
  0x69   :  { %2080 = vmatmul.msk.bf16.gmra.mxu0 %vm259_vm0, %v2176_v26  ;;  %2088 = vmatmul.msk.bf16.gmra.mxu1 %vm259_vm0, %v2184_v27 }
  0x6a   :  { %2096 = vmatmul.msk.bf16.gmra.mxu2 %vm259_vm0, %v2192_v28  ;;  %2104 = vmatmul.msk.bf16.gmra.mxu3 %vm259_vm0, %v2200_v29 }
  0x79   :  { %2081 = vmatmul.msk.bf16.gmra.mxu0 %vm259_vm0, %v2177_v30  ;;  %2089 = vmatmul.msk.bf16.gmra.mxu1 %vm259_vm0, %v2185_v31 }
  0x7a   :  { %2097 = vmatmul.msk.bf16.gmra.mxu2 %vm259_vm0, %v2193_v32  ;;  %2105 = vmatmul.msk.bf16.gmra.mxu3 %vm259_vm0, %v2201_v33 }
  0x86   :  { %v365_v35 = vpop.f32.mrf.mxu0  ;;  %v405_v36 = vpop.f32.mrf.mxu1 }
  0x87   :  { %v2629_v37 = vadd.f32 %v2626_v34, %v365_v35  ;;  %v2632_v38 = vadd.f32 %v2626_v34, %v405_v36 }
  0x89   :  { %v2106_v39 = vmul.f32 -1.442695, %v2629_v37  ;;  %v2122_v40 = vmul.f32 -1.442695, %v2632_v38 }
  0x8b   :  { %2211 = vpow2.f32 %v2106_v39 }
  0x8c   :  { %2213 = vpow2.f32 %v2122_v40 }
  0x8d   :  { %v445_v41 = vpop.f32.mrf.mxu2  ;;  %v485_v42 = vpop.f32.mrf.mxu3 }
  0x8e   :  { %v2637_v43 = vadd.f32 %v2626_v34, %v445_v41  ;;  %v2640_v44 = vadd.f32 %v2626_v34, %v485_v42  ;;  %v367_v45 = vpop.f32.mrf.mxu0  ;;  %v407_v46 = vpop.f32.mrf.mxu1 }
  0x8f   :  { %v2643_v47 = vadd.f32 %v2626_v34, %v367_v45  ;;  %v2646_v48 = vadd.f32 %v2626_v34, %v407_v46 }
  0x90   :  { %v2138_v49 = vmul.f32 -1.442695, %v2637_v43  ;;  %v2154_v50 = vmul.f32 -1.442695, %v2640_v44 }
  0x91   :  { %v2212_v51 = vpop.eup %2211  ;;  %v2107_v54 = vmul.f32 -1.442695, %v2643_v47  ;;  %v2123_v56 = vmul.f32 -1.442695, %v2646_v48 }
  0x92   :  { %v2214_v52 = vpop.eup %2213  ;;  %v2650_v53 = vadd.f32 1.0, %v2212_v51  ;;  %2215 = vpow2.f32 %v2138_v49 }
  0x93   :  { %v2653_v55 = vadd.f32 1.0, %v2214_v52  ;;  %2217 = vpow2.f32 %v2154_v50 }
  0x94   :  { %2219 = vrcp.f32 %v2650_v53  ;;  %v790_v61 = vand.u32 2147483647, %v2650_v53  ;;  %v792_v62 = vand.u32 2147483648, %v2650_v53  ;;  %vm786_vm1 = vweird.f32 %v2650_v53 }
  0x95   :  { %2221 = vrcp.f32 %v2653_v55  ;;  %v447_v57 = vpop.f32.mrf.mxu2  ;;  %v487_v58 = vpop.f32.mrf.mxu3  ;;  %v1030_v1 = vand.u32 2147483647, %v2653_v55  ;;  %v1032_v5 = vand.u32 2147483648, %v2653_v55  ;;  %vm1026_vm2 = vweird.f32 %v2653_v55 }
  0x96   :  { %2223 = vpow2.f32 %v2107_v54  ;;  %v2659_v59 = vadd.f32 %v2626_v34, %v447_v57  ;;  %v370_v60 = vpop.f32.mrf.mxu0  ;;  %v410_v63 = vpop.f32.mrf.mxu1  ;;  %v2666_v3 = vadd.f32 %v2626_v34, %v487_v58  ;;  %vm2682_vm3 = vcmp.eq.f32.partialorder %v790_v61, 8.507059e+37 }
  0x97   :  { %2225 = vpow2.f32 %v2123_v56  ;;  %v2672_v7 = vadd.f32 %v2626_v34, %v370_v60  ;;  %v2679_v10 = vadd.f32 %v2626_v34, %v410_v63  ;;  %v793_v14 = vor.u32 1.1754944e-38, %v792_v62 }
  0x98   :  { %v2216_v0 = vpop.eup %2215  ;;  %v2139_v2 = vmul.f32 -1.442695, %v2659_v59  ;;  %vm2688_vm4 = vcmp.eq.f32.partialorder %v1030_v1, 8.507059e+37  ;;  %v2155_v18 = vmul.f32 -1.442695, %v2666_v3  ;;  %v1033_v21 = vor.u32 1.1754944e-38, %v1032_v5 }
  0x99   :  { %v2218_v4 = vpop.eup %2217  ;;  %v2669_v6 = vadd.f32 1.0, %v2216_v0  ;;  %v2695_v22 = vmul.f32 -1.442695, %v2672_v7  ;;  %v2699_v25 = vmul.f32 -1.442695, %v2679_v10 }
  0x9a   :  { %v2220_v8 = vpop.eup %2219  ;;  %v2676_v9 = vadd.f32 1.0, %v2218_v4 }
  0x9b   :  { %v2222_v11 = vpop.eup %2221  ;;  %v782_v12 = vmul.f32 %v2220_v8, %v2650_v53  ;;  %2227 = vrcp.f32 %v2669_v6  ;;  %vm787_vm5 = vweird.f32 %v2220_v8  ;;  %v1270_v24 = vand.u32 2147483647, %v2669_v6 }
  0x9c   :  { %v2224_v15 = vpop.eup %2223  ;;  %v1022_v16 = vmul.f32 %v2222_v11, %v2653_v55  ;;  %2229 = vpow2.f32 %v2139_v2  ;;  %v1272_v27 = vand.u32 2147483648, %v2669_v6  ;;  %vm1027_vm7 = vweird.f32 %v2222_v11  ;;  %vm788_vm9 = vmor %vm786_vm1, %vm787_vm5 }
  0x9d   :  { %v2226_v19 = vpop.eup %2225  ;;  %v783_v20 = vsub.f32 1.0, %v782_v12  ;;  %2231 = vrcp.f32 %v2676_v9  ;;  %v2702_v28 = vadd.f32 1.0, %v2224_v15  ;;  %v1510_v31 = vand.u32 2147483647, %v2676_v9  ;;  %v450_v42 = vpop.f32.mrf.mxu2  ;;  %vm1028_vm12 = vmor %vm1026_vm2, %vm1027_vm7 }
  0x9e   :  { %v1023_v23 = vsub.f32 1.0, %v1022_v16  ;;  %v2704_v29 = vadd.f32 1.0, %v2226_v19  ;;  %2233 = vpow2.f32 %v2155_v18  ;;  %vm1266_vm8 = vweird.f32 %v2669_v6 }
  0x9f   :  { %v784_v26 = vmul.f32 %v2220_v8, %v783_v20  ;;  %v1512_v35 = vand.u32 2147483648, %v2676_v9  ;;  %2235 = vrcp.f32 %v2702_v28  ;;  %vm2714_vm10 = vcmp.eq.f32.partialorder %v1270_v24, 8.507059e+37 }
  0xa0   :  { %v1024_v30 = vmul.f32 %v2222_v11, %v1023_v23  ;;  %vm1506_vm11 = vweird.f32 %v2676_v9  ;;  %v1273_v49 = vor.u32 1.1754944e-38, %v1272_v27  ;;  %v805_v50 = vand.u32 2147483647, %v2702_v28 }
  0xa1   :  { %v2228_v32 = vpop.eup %2227  ;;  %v785_v33 = vadd.f32 %v2220_v8, %v784_v26  ;;  %2237 = vrcp.f32 %v2704_v29  ;;  %vm2727_vm13 = vcmp.eq.f32.partialorder %v1510_v31, 8.507059e+37  ;;  %v1513_v58 = vor.u32 1.1754944e-38, %v1512_v35 }
  0xa2   :  { %v2230_v36 = vpop.eup %2229  ;;  %v1025_v39 = vadd.f32 %v2222_v11, %v1024_v30  ;;  %v1262_v40 = vmul.f32 %v2228_v32, %v2669_v6  ;;  %v2735_v60 = vadd.f32 %v2626_v34, %v450_v42  ;;  %vm1267_vm14 = vweird.f32 %v2228_v32 }
  0xa3   :  { %v2232_v45 = vpop.eup %2231  ;;  %v789_v46 = vsel %vm788_vm9, %v2220_v8, %v785_v33  ;;  %vm801_vm15 = vweird.f32 %v2702_v28  ;;  %v2740_v4 = vadd.f32 1.0, %v2230_v36  ;;  %vm2743_vm1 = vcmp.eq.f32.partialorder %v805_v50, 8.507059e+37  ;;  %vm1268_vm2 = vmor %vm1266_vm8, %vm1267_vm14 }
  0xa4   :  { %v794_v51 = vsel %vm2682_vm3, %v793_v14, %v789_v46  ;;  %v1029_v52 = vsel %vm1028_vm12, %v2222_v11, %v1025_v39  ;;  %v1263_v53 = vsub.f32 1.0, %v1262_v40  ;;  %v1502_v54 = vmul.f32 %v2232_v45, %v2676_v9  ;;  %v2234_v61 = vpop.eup %2233 }
  0xa5   :  { %v1741_v57 = vmul.f32 %v794_v51, %v2629_v37  ;;  %v1034_v55 = vsel %vm2688_vm4, %v1033_v21, %v1029_v52  ;;  %v2236_v1 = vpop.eup %2235  ;;  %vm1507_vm0 = vweird.f32 %v2232_v45  ;;  %v807_v37 = vand.u32 2147483648, %v2702_v28 }
  0xa6   :  { %v1757_v62 = vmul.f32 %v1034_v55, %v2632_v38  ;;  %v1264_v63 = vmul.f32 %v2228_v32, %v1263_v53  ;;  %v1503_v0 = vsub.f32 1.0, %v1502_v54  ;;  %v797_v12 = vmul.f32 %v2236_v1, %v2702_v28  ;;  %vm1508_vm4 = vmor %vm1506_vm11, %vm1507_vm0  ;;  %v490_v28 = vpop.f32.mrf.mxu3  ;;  %v372_v54 = vpop.f32.mrf.mxu0 }
  0xa7   :  { %v1805_v2 = vpack.c.bf16 %v1741_v57, %v1741_v57  ;;  %v2238_v38 = vpop.eup %2237  ;;  %vm1041_vm3 = vweird.f32 %v2704_v29  ;;  %v1045_v14 = vand.u32 2147483647, %v2704_v29  ;;  %2239 = vrcp.f32 %v2740_v4 }
  0xa8   :  { %v1821_v5 = vpack.c.bf16 %v1757_v62, %v1757_v62  ;;  %v1265_v8 = vadd.f32 %v2228_v32, %v1264_v63  ;;  %v1504_v11 = vmul.f32 %v2232_v45, %v1503_v0  ;;  %v2757_v15 = vadd.f32 1.0, %v2234_v61 }
  0xa9   :  { %1870 = vst.msk [vmem:[%s4108_s3] sm:$0xf] %vm1869_vm6, %v1805_v2  ;;  %v798_v18 = vsub.f32 1.0, %v797_v12  ;;  %v1037_v19 = vmul.f32 %v2238_v38, %v2704_v29  ;;  %vm802_vm5 = vweird.f32 %v2236_v1  ;;  %vm1042_vm7 = vweird.f32 %v2238_v38 }
  0xaa   :  { %1886 = vst.msk [vmem:[%s4108_s3 + $0x40] sm:$0xf] %vm1869_vm6, %v1821_v5  ;;  %v1269_v16 = vsel %vm1268_vm2, %v2228_v32, %v1265_v8  ;;  %v1505_v17 = vadd.f32 %v2232_v45, %v1504_v11  ;;  %v1047_v20 = vand.u32 2147483648, %v2704_v29  ;;  %v1285_v30 = vand.u32 2147483647, %v2740_v4  ;;  %vm803_vm8 = vmor %vm801_vm15, %vm802_vm5 }
  0xab   :  { %v1274_v6 = vsel %vm2714_vm10, %v1273_v49, %v1269_v16  ;;  %v799_v24 = vmul.f32 %v2236_v1, %v798_v18  ;;  %v1038_v26 = vsub.f32 1.0, %v1037_v19  ;;  %v1287_v31 = vand.u32 2147483648, %v2740_v4  ;;  %vm1043_vm11 = vmor %vm1041_vm3, %vm1042_vm7 }
  0xac   :  { %v1773_v21 = vmul.f32 %v1274_v6, %v2637_v43  ;;  %v1509_v23 = vsel %vm1508_vm4, %v2232_v45, %v1505_v17  ;;  %2241 = vrcp.f32 %v2757_v15  ;;  %v808_v43 = vor.u32 1.1754944e-38, %v807_v37  ;;  %v452_v37 = vpop.f32.mrf.mxu2 }
  0xad   :  { %v1514_v27 = vsel %vm2727_vm13, %v1513_v58, %v1509_v23  ;;  %v800_v33 = vadd.f32 %v2236_v1, %v799_v24  ;;  %v1039_v35 = vmul.f32 %v2238_v38, %v1038_v26  ;;  %v2240_v36 = vpop.eup %2239  ;;  %vm2780_vm9 = vcmp.eq.f32.partialorder %v1045_v14, 8.507059e+37  ;;  %v412_v58 = vpop.f32.mrf.mxu1 }
  0xae   :  { %v1837_v9 = vpack.c.bf16 %v1773_v21, %v1773_v21  ;;  %v1789_v32 = vmul.f32 %v1514_v27, %v2640_v44  ;;  %v1048_v40 = vor.u32 1.1754944e-38, %v1047_v20  ;;  %vm1281_vm10 = vweird.f32 %v2740_v4  ;;  %v492_v21 = vpop.f32.mrf.mxu3 }
  0xaf   :  { %v804_v41 = vsel %vm803_vm8, %v2236_v1, %v800_v33  ;;  %v1040_v42 = vadd.f32 %v2238_v38, %v1039_v35  ;;  %v1277_v45 = vmul.f32 %v2240_v36, %v2740_v4  ;;  %vm1282_vm12 = vweird.f32 %v2240_v36 }
  0xb0   :  { %1902 = vst.msk [vmem:[%s4108_s3 + $0x80] sm:$0xf] %vm1869_vm6, %v1837_v9  ;;  %v1853_v44 = vpack.c.bf16 %v1789_v32, %v1789_v32  ;;  %v809_v46 = vsel %vm2743_vm1, %v808_v43, %v804_v41  ;;  %vm2795_vm13 = vcmp.eq.f32.partialorder %v1285_v30, 8.507059e+37  ;;  %v1288_v50 = vor.u32 1.1754944e-38, %v1287_v31  ;;  %vm1283_vm15 = vmor %vm1281_vm10, %vm1282_vm12  ;;  %v375_v30 = vpop.f32.mrf.mxu0 }
  0xb1   :  { %v1742_v51 = vmul.f32 %v809_v46, %v2643_v47  ;;  %v1044_v52 = vsel %vm1043_vm11, %v2238_v38, %v1040_v42  ;;  %v1278_v53 = vsub.f32 1.0, %v1277_v45  ;;  %2243 = vpow2.f32 %v2695_v22 }
  0xb2   :  { %1918 = vst.msk [vmem:[%s4108_s3 + $0xc0] sm:$0xf] %vm1869_vm6, %v1853_v44  ;;  %v2242_v29 = vpop.eup %2241  ;;  %v1049_v56 = vsel %vm2780_vm9, %v1048_v40, %v1044_v52  ;;  %2245 = vpow2.f32 %v2699_v25  ;;  %v2140_v57 = vmul.f32 -1.442695, %v2735_v60  ;;  %v2810_v55 = vadd.f32 %v2626_v34, %v490_v28 }
  0xb3   :  { %v1806_v61 = vpack.c.bf16 %v1742_v51, %v1742_v51  ;;  %v1758_v47 = vmul.f32 %v1049_v56, %v2646_v48  ;;  %v1279_v62 = vmul.f32 %v2240_v36, %v1278_v53  ;;  %v1517_v63 = vmul.f32 %v2242_v29, %v2757_v15 }
  0xb4   :  { %vm1521_vm14 = vweird.f32 %v2757_v15  ;;  %2247 = vpow2.f32 %v2140_v57  ;;  %v2156_v22 = vmul.f32 -1.442695, %v2810_v55  ;;  %v2817_v0 = vadd.f32 %v2626_v34, %v372_v54 }
  0xb5   :  { %1871 = vst.msk [vmem:[%s4108_s3 + $0x4] sm:$0xf] %vm1869_vm6, %v1806_v61  ;;  %v1822_v25 = vpack.c.bf16 %v1758_v47, %v1758_v47  ;;  %v1280_v1 = vadd.f32 %v2240_v36, %v1279_v62  ;;  %v1518_v2 = vsub.f32 1.0, %v1517_v63  ;;  %v2824_v48 = vadd.f32 %v2626_v34, %v412_v58 }
  0xb6   :  { %v1525_v5 = vand.u32 2147483647, %v2757_v15  ;;  %v1527_v8 = vand.u32 2147483648, %v2757_v15  ;;  %2249 = vpow2.f32 %v2156_v22  ;;  %v2109_v11 = vmul.f32 -1.442695, %v2817_v0 }
  0xb7   :  { %v2244_v12 = vpop.eup %2243  ;;  %1887 = vst.msk [vmem:[%s4108_s3 + $0x44] sm:$0xf] %vm1869_vm6, %v1822_v25  ;;  %v1284_v13 = vsel %vm1283_vm15, %v2240_v36, %v1280_v1  ;;  %v1519_v38 = vmul.f32 %v2242_v29, %v1518_v2  ;;  %vm1522_vm0 = vweird.f32 %v2242_v29  ;;  %v2125_v14 = vmul.f32 -1.442695, %v2824_v48 }
  0xb8   :  { %v2246_v4 = vpop.eup %2245  ;;  %v1289_v16 = vsel %vm2795_vm13, %v1288_v50, %v1284_v13  ;;  %v2839_v17 = vadd.f32 1.0, %v2244_v12  ;;  %2251 = vpow2.f32 %v2109_v11  ;;  %v2842_v18 = vadd.f32 %v2626_v34, %v452_v37  ;;  %vm1523_vm1 = vmor %vm1521_vm14, %vm1522_vm0 }
  0xb9   :  { %v1774_v19 = vmul.f32 %v1289_v16, %v2659_v59  ;;  %v1520_v6 = vadd.f32 %v2242_v29, %v1519_v38  ;;  %v2845_v20 = vadd.f32 1.0, %v2246_v4  ;;  %2253 = vpow2.f32 %v2125_v14 }
  0xba   :  { %v2248_v23 = vpop.eup %2247  ;;  %v1528_v24 = vor.u32 1.1754944e-38, %v1527_v8  ;;  %2255 = vrcp.f32 %v2839_v17  ;;  %vm1526_vm2 = vcmp.eq.f32.partialorder %v1525_v5, 8.507059e+37  ;;  %v820_v9 = vand.u32 2147483647, %v2839_v17  ;;  %v495_v8 = vpop.f32.mrf.mxu3 }
  0xbb   :  { %v1838_v26 = vpack.c.bf16 %v1774_v19, %v1774_v19  ;;  %v1524_v27 = vsel %vm1523_vm1, %v2242_v29, %v1520_v6  ;;  %2257 = vrcp.f32 %v2845_v20  ;;  %v2141_v32 = vmul.f32 -1.442695, %v2842_v18 }
  0xbc   :  { %v2250_v31 = vpop.eup %2249  ;;  %v1529_v59 = vsel %vm1526_vm2, %v1528_v24, %v1524_v27  ;;  %v2854_v33 = vadd.f32 %v2626_v34, %v492_v21  ;;  %v822_v35 = vand.u32 2147483648, %v2839_v17  ;;  %v2862_v36 = vadd.f32 1.0, %v2248_v23 }
  0xbd   :  { %1903 = vst.msk [vmem:[%s4108_s3 + $0x84] sm:$0xf] %vm1869_vm6, %v1838_v26  ;;  %v1790_v15 = vmul.f32 %v1529_v59, %v2666_v3  ;;  %v2864_v43 = vadd.f32 1.0, %v2250_v31  ;;  %v1060_v40 = vand.u32 2147483647, %v2845_v20  ;;  %v1062_v44 = vand.u32 2147483648, %v2845_v20 }
  0xbe   :  { %v2252_v39 = vpop.eup %2251  ;;  %v2869_v41 = vadd.f32 %v2626_v34, %v375_v30  ;;  %2259 = vrcp.f32 %v2862_v36  ;;  %vm816_vm3 = vweird.f32 %v2839_v17  ;;  %vm1056_vm4 = vweird.f32 %v2845_v20 }
  0xbf   :  { %v2254_v42 = vpop.eup %2253  ;;  %v1854_v45 = vpack.c.bf16 %v1790_v15, %v1790_v15  ;;  %2261 = vrcp.f32 %v2864_v43  ;;  %v2157_v3 = vmul.f32 -1.442695, %v2854_v33  ;;  %vm2881_vm5 = vcmp.eq.f32.partialorder %v820_v9, 8.507059e+37 }
  0xc0   :  { %v2256_v28 = vpop.eup %2255  ;;  %v823_v51 = vor.u32 1.1754944e-38, %v822_v35  ;;  %2263 = vpow2.f32 %v2141_v32  ;;  %vm2886_vm7 = vcmp.eq.f32.partialorder %v1060_v40, 8.507059e+37  ;;  %v1063_v54 = vor.u32 1.1754944e-38, %v1062_v44 }
  0xc1   :  { %v2258_v46 = vpop.eup %2257  ;;  %1919 = vst.msk [vmem:[%s4108_s3 + $0xc4] sm:$0xf] %vm1869_vm6, %v1854_v45  ;;  %v812_v49 = vmul.f32 %v2256_v28, %v2839_v17  ;;  %v1300_v29 = vand.u32 2147483647, %v2862_v36  ;;  %v2892_v56 = vmul.f32 -1.442695, %v2869_v41  ;;  %vm1296_vm8 = vweird.f32 %v2862_v36  ;;  %v415_v45 = vpop.f32.mrf.mxu1 }
  0xc2   :  { %v1052_v52 = vmul.f32 %v2258_v46, %v2845_v20  ;;  %v1302_v58 = vand.u32 2147483648, %v2862_v36  ;;  %v1540_v61 = vand.u32 2147483647, %v2864_v43  ;;  %v2896_v47 = vadd.f32 1.0, %v2252_v39 }
  0xc3   :  { %v813_v57 = vsub.f32 1.0, %v812_v49  ;;  %v1542_v63 = vand.u32 2147483648, %v2864_v43  ;;  %v2900_v22 = vadd.f32 1.0, %v2254_v42  ;;  %2265 = vpow2.f32 %v2157_v3 }
  0xc4   :  { %v1053_v62 = vsub.f32 1.0, %v1052_v52  ;;  %v2260_v25 = vpop.eup %2259  ;;  %vm817_vm9 = vweird.f32 %v2256_v28  ;;  %vm1536_vm10 = vweird.f32 %v2864_v43  ;;  %2267 = vrcp.f32 %v2896_v47 }
  0xc5   :  { %v814_v1 = vmul.f32 %v2256_v28, %v813_v57  ;;  %v2262_v2 = vpop.eup %2261  ;;  %vm1057_vm11 = vweird.f32 %v2258_v46  ;;  %v1292_v5 = vmul.f32 %v2260_v25, %v2862_v36  ;;  %vm2905_vm12 = vcmp.eq.f32.partialorder %v1300_v29, 8.507059e+37  ;;  %vm818_vm14 = vmor %vm816_vm3, %vm817_vm9 }
  0xc6   :  { %v1054_v37 = vmul.f32 %v2258_v46, %v1053_v62  ;;  %v2264_v11 = vpop.eup %2263  ;;  %v1303_v13 = vor.u32 1.1754944e-38, %v1302_v58  ;;  %v1532_v38 = vmul.f32 %v2262_v2, %v2864_v43  ;;  %vm2910_vm13 = vcmp.eq.f32.partialorder %v1540_v61, 8.507059e+37  ;;  %vm1058_vm15 = vmor %vm1056_vm4, %vm1057_vm11 }
  0xc7   :  { %v815_v12 = vadd.f32 %v2256_v28, %v814_v1  ;;  %v1293_v16 = vsub.f32 1.0, %v1292_v5  ;;  %v1543_v19 = vor.u32 1.1754944e-38, %v1542_v63  ;;  %2269 = vrcp.f32 %v2900_v22 }
  0xc8   :  { %v1055_v4 = vadd.f32 %v2258_v46, %v1054_v37  ;;  %vm1297_vm0 = vweird.f32 %v2260_v25  ;;  %v1533_v21 = vsub.f32 1.0, %v1532_v38  ;;  %v835_v23 = vand.u32 2147483647, %v2896_v47 }
  0xc9   :  { %v819_v6 = vsel %vm818_vm14, %v2256_v28, %v815_v12  ;;  %v2266_v24 = vpop.eup %2265  ;;  %v1294_v17 = vmul.f32 %v2260_v25, %v1293_v16  ;;  %v837_v30 = vand.u32 2147483648, %v2896_v47  ;;  %vm1537_vm1 = vweird.f32 %v2262_v2  ;;  %vm1298_vm2 = vmor %vm1296_vm8, %vm1297_vm0  ;;  %v377_v16 = vpop.f32.mrf.mxu0 }
  0xca   :  { %v824_v26 = vsel %vm2881_vm5, %v823_v51, %v819_v6  ;;  %v1059_v27 = vsel %vm1058_vm15, %v2258_v46, %v1055_v4  ;;  %v2268_v31 = vpop.eup %2267  ;;  %v1534_v20 = vmul.f32 %v2262_v2, %v1533_v21  ;;  %v1075_v39 = vand.u32 2147483647, %v2900_v22  ;;  %vm1538_vm3 = vmor %vm1536_vm10, %vm1537_vm1 }
  0xcb   :  { %v1743_v59 = vmul.f32 %v824_v26, %v2672_v7  ;;  %v1064_v9 = vsel %vm2886_vm7, %v1063_v54, %v1059_v27  ;;  %v1295_v15 = vadd.f32 %v2260_v25, %v1294_v17  ;;  %v827_v35 = vmul.f32 %v2268_v31, %v2896_v47  ;;  %v455_v54 = vpop.f32.mrf.mxu2 }
  0xcc   :  { %v1759_v32 = vmul.f32 %v1064_v9, %v2679_v10  ;;  %v1535_v44 = vadd.f32 %v2262_v2, %v1534_v20  ;;  %v1077_v7 = vand.u32 2147483648, %v2900_v22  ;;  %v2933_v42 = vadd.f32 1.0, %v2264_v11 }
  0xcd   :  { %v1807_v40 = vpack.c.bf16 %v1743_v59, %v1743_v59  ;;  %v2270_v28 = vpop.eup %2269  ;;  %v1299_v46 = vsel %vm1298_vm2, %v2260_v25, %v1295_v15  ;;  %v828_v10 = vsub.f32 1.0, %v827_v35  ;;  %v2937_v49 = vadd.f32 1.0, %v2266_v24 }
  0xce   :  { %v1823_v3 = vpack.c.bf16 %v1759_v32, %v1759_v32  ;;  %v1304_v36 = vsel %vm2905_vm12, %v1303_v13, %v1299_v46  ;;  %v1539_v50 = vsel %vm1538_vm3, %v2262_v2, %v1535_v44  ;;  %vm832_vm4 = vweird.f32 %v2268_v31 }
  0xcf   :  { %1872 = vst.msk [vmem:[%s4108_s3 + $0x8] sm:$0xf] %vm1869_vm6, %v1807_v40  ;;  %v1067_v51 = vmul.f32 %v2270_v28, %v2900_v22  ;;  %v1775_v43 = vmul.f32 %v1304_v36, %v2735_v60  ;;  %v1544_v52 = vsel %vm2910_vm13, %v1543_v19, %v1539_v50  ;;  %v829_v53 = vmul.f32 %v2268_v31, %v828_v10  ;;  %v417_v19 = vpop.f32.mrf.mxu1 }
  0xd0   :  { %1888 = vst.msk [vmem:[%s4108_s3 + $0x48] sm:$0xf] %vm1869_vm6, %v1823_v3  ;;  %2271 = vrcp.f32 %v2933_v42  ;;  %v1791_v29 = vmul.f32 %v1544_v52, %v2810_v55  ;;  %vm831_vm5 = vweird.f32 %v2896_v47  ;;  %v2957_v58 = vadd.f32 %v2626_v34, %v415_v45 }
  0xd1   :  { %v1068_v57 = vsub.f32 1.0, %v1067_v51  ;;  %v1839_v61 = vpack.c.bf16 %v1775_v43, %v1775_v43  ;;  %v830_v62 = vadd.f32 %v2268_v31, %v829_v53  ;;  %vm836_vm7 = vcmp.eq.f32.partialorder %v835_v23, 8.507059e+37  ;;  %vm833_vm8 = vmor %vm831_vm5, %vm832_vm4 }
  0xd2   :  { %2273 = vrcp.f32 %v2937_v49  ;;  %v1855_v60 = vpack.c.bf16 %v1791_v29, %v1791_v29  ;;  %v838_v63 = vor.u32 1.1754944e-38, %v837_v30  ;;  %vm1072_vm9 = vweird.f32 %v2270_v28 }
  0xd3   :  { %v1069_v25 = vmul.f32 %v2270_v28, %v1068_v57  ;;  %1904 = vst.msk [vmem:[%s4108_s3 + $0x88] sm:$0xf] %vm1869_vm6, %v1839_v61  ;;  %v834_v55 = vsel %vm833_vm8, %v2268_v31, %v830_v62  ;;  %vm1071_vm10 = vweird.f32 %v2900_v22  ;;  %vm2966_vm11 = vcmp.eq.f32.partialorder %v1075_v39, 8.507059e+37 }
  0xd4   :  { %v1078_v1 = vor.u32 1.1754944e-38, %v1077_v7  ;;  %1920 = vst.msk [vmem:[%s4108_s3 + $0xc8] sm:$0xf] %vm1869_vm6, %v1855_v60  ;;  %v839_v2 = vsel %vm836_vm7, %v838_v63, %v834_v55  ;;  %vm1311_vm12 = vweird.f32 %v2933_v42  ;;  %2275 = vpow2.f32 %v2892_v56  ;;  %vm1073_vm13 = vmor %vm1071_vm10, %vm1072_vm9 }
  0xd5   :  { %v1070_v37 = vadd.f32 %v2270_v28, %v1069_v25  ;;  %v2126_v5 = vmul.f32 -1.442695, %v2957_v58  ;;  %v1744_v11 = vmul.f32 %v839_v2, %v2817_v0  ;;  %v1315_v12 = vand.u32 2147483647, %v2933_v42 }
  0xd6   :  { %v2272_v22 = vpop.eup %2271  ;;  %v1317_v13 = vand.u32 2147483648, %v2933_v42  ;;  %v2982_v38 = vadd.f32 %v2626_v34, %v455_v54  ;;  %v1555_v56 = vand.u32 2147483647, %v2937_v49  ;;  %v2990_v24 = vadd.f32 %v2626_v34, %v495_v8  ;;  %v497_v54 = vpop.f32.mrf.mxu3 }
  0xd7   :  { %v1074_v14 = vsel %vm1073_vm13, %v2270_v28, %v1070_v37  ;;  %v1307_v4 = vmul.f32 %v2272_v22, %v2933_v42  ;;  %2277 = vpow2.f32 %v2126_v5  ;;  %v1808_v21 = vpack.c.bf16 %v1744_v11, %v1744_v11 }
  0xd8   :  { %v2274_v6 = vpop.eup %2273  ;;  %v1079_v0 = vsel %vm2966_vm11, %v1078_v1, %v1074_v14  ;;  %v2142_v23 = vmul.f32 -1.442695, %v2982_v38  ;;  %v1557_v30 = vand.u32 2147483648, %v2937_v49  ;;  %v2158_v31 = vmul.f32 -1.442695, %v2990_v24 }
  0xd9   :  { %v1760_v26 = vmul.f32 %v1079_v0, %v2824_v48  ;;  %v1308_v27 = vsub.f32 1.0, %v1307_v4  ;;  %v1547_v17 = vmul.f32 %v2274_v6, %v2937_v49  ;;  %1873 = vst.msk [vmem:[%s4108_s3 + $0xc] sm:$0xf] %vm1869_vm6, %v1808_v21  ;;  %v3001_v59 = vadd.f32 %v2626_v34, %v377_v16  ;;  %v457_v48 = vpop.f32.mrf.mxu2 }
  0xda   :  { %2279 = vpow2.f32 %v2142_v23  ;;  %v3004_v9 = vadd.f32 %v2626_v34, %v417_v19  ;;  %v2276_v20 = vpop.eup %2275  ;;  %vm1312_vm14 = vweird.f32 %v2272_v22  ;;  %vm1552_vm15 = vweird.f32 %v2274_v6 }
  0xdb   :  { %v1824_v32 = vpack.c.bf16 %v1760_v26, %v1760_v26  ;;  %v1309_v15 = vmul.f32 %v2272_v22, %v1308_v27  ;;  %v1548_v35 = vsub.f32 1.0, %v1547_v17  ;;  %v3006_v39 = vadd.f32 1.0, %v2276_v20  ;;  %vm1313_vm0 = vmor %vm1311_vm12, %vm1312_vm14 }
  0xdc   :  { %2281 = vpow2.f32 %v2158_v31  ;;  %v2111_v40 = vmul.f32 -1.442695, %v3001_v59  ;;  %v2127_v44 = vmul.f32 -1.442695, %v3004_v9  ;;  %v3015_v3 = vadd.f32 %v2626_v34, %v457_v48 }
  0xdd   :  { %v2278_v7 = vpop.eup %2277  ;;  %1889 = vst.msk [vmem:[%s4108_s3 + $0x4c] sm:$0xf] %vm1869_vm6, %v1824_v32  ;;  %v1310_v45 = vadd.f32 %v2272_v22, %v1309_v15  ;;  %v1549_v28 = vmul.f32 %v2274_v6, %v1548_v35  ;;  %vm1316_vm1 = vcmp.eq.f32.partialorder %v1315_v12, 8.507059e+37  ;;  %v1318_v46 = vor.u32 1.1754944e-38, %v1317_v13 }
  0xde   :  { %vm1551_vm2 = vweird.f32 %v2937_v49  ;;  %2283 = vrcp.f32 %v3006_v39  ;;  %v3021_v50 = vadd.f32 1.0, %v2278_v7  ;;  %vm1556_vm4 = vcmp.eq.f32.partialorder %v1555_v56, 8.507059e+37  ;;  %v500_v16 = vpop.f32.mrf.mxu3 }
  0xdf   :  { %v1314_v10 = vsel %vm1313_vm0, %v2272_v22, %v1310_v45  ;;  %v1550_v36 = vadd.f32 %v2274_v6, %v1549_v28  ;;  %2285 = vpow2.f32 %v2111_v40  ;;  %vm1553_vm3 = vmor %vm1551_vm2, %vm1552_vm15  ;;  %v1558_v52 = vor.u32 1.1754944e-38, %v1557_v30 }
  0xe0   :  { %v2280_v51 = vpop.eup %2279  ;;  %v1319_v43 = vsel %vm1316_vm1, %v1318_v46, %v1314_v10  ;;  %2287 = vpow2.f32 %v2127_v44  ;;  %v2143_v49 = vmul.f32 -1.442695, %v3015_v3  ;;  %v850_v61 = vand.u32 2147483647, %v3006_v39 }
  0xe1   :  { %v1776_v42 = vmul.f32 %v1319_v43, %v2842_v18  ;;  %v1554_v53 = vsel %vm1553_vm3, %v2274_v6, %v1550_v36  ;;  %2289 = vrcp.f32 %v3021_v50  ;;  %v852_v62 = vand.u32 2147483648, %v3006_v39 }
  0xe2   :  { %v2282_v29 = vpop.eup %2281  ;;  %v1559_v57 = vsel %vm1556_vm4, %v1558_v52, %v1554_v53  ;;  %v3028_v60 = vadd.f32 1.0, %v2280_v51  ;;  %v1090_v47 = vand.u32 2147483647, %v3021_v50  ;;  %v1092_v1 = vand.u32 2147483648, %v3021_v50 }
  0xe3   :  { %v1840_v63 = vpack.c.bf16 %v1776_v42, %v1776_v42  ;;  %v1792_v25 = vmul.f32 %v1559_v57, %v2854_v33  ;;  %v3031_v55 = vadd.f32 1.0, %v2282_v29  ;;  %v3037_v2 = vadd.f32 %v2626_v34, %v497_v54 }
  0xe4   :  { %v2284_v18 = vpop.eup %2283  ;;  %2291 = vrcp.f32 %v3028_v60  ;;  %vm846_vm5 = vweird.f32 %v3006_v39  ;;  %vm3045_vm7 = vcmp.eq.f32.partialorder %v850_v61, 8.507059e+37  ;;  %v853_v11 = vor.u32 1.1754944e-38, %v852_v62  ;;  %v380_v62 = vpop.f32.mrf.mxu0 }
  0xe5   :  { %v2286_v37 = vpop.eup %2285  ;;  %1905 = vst.msk [vmem:[%s4108_s3 + $0x8c] sm:$0xf] %vm1869_vm6, %v1840_v63  ;;  %v1856_v5 = vpack.c.bf16 %v1792_v25, %v1792_v25  ;;  %v842_v33 = vmul.f32 %v2284_v18, %v3006_v39  ;;  %2293 = vpow2.f32 %v2143_v49  ;;  %v1330_v34 = vand.u32 2147483647, %v3028_v60 }
  0xe6   :  { %v2288_v8 = vpop.eup %2287  ;;  %2295 = vrcp.f32 %v3031_v55  ;;  %vm1086_vm8 = vweird.f32 %v3021_v50  ;;  %v1332_v14 = vand.u32 2147483648, %v3028_v60  ;;  %v3057_v4 = vadd.f32 1.0, %v2286_v37 }
  0xe7   :  { %v2290_v12 = vpop.eup %2289  ;;  %1921 = vst.msk [vmem:[%s4108_s3 + $0xcc] sm:$0xf] %vm1869_vm6, %v1856_v5  ;;  %v843_v13 = vsub.f32 1.0, %v842_v33  ;;  %vm3060_vm9 = vcmp.eq.f32.partialorder %v1090_v47, 8.507059e+37  ;;  %v1093_v19 = vor.u32 1.1754944e-38, %v1092_v1  ;;  %v1572_v6 = vand.u32 2147483648, %v3031_v55  ;;  %v460_v47 = vpop.f32.mrf.mxu2 }
  0xe8   :  { %v1082_v56 = vmul.f32 %v2290_v12, %v3021_v50  ;;  %vm847_vm10 = vweird.f32 %v2284_v18  ;;  %v1570_v0 = vand.u32 2147483647, %v3031_v55  ;;  %2297 = vrcp.f32 %v3057_v4 }
  0xe9   :  { %v844_v21 = vmul.f32 %v2284_v18, %v843_v13  ;;  %vm1326_vm11 = vweird.f32 %v3028_v60  ;;  %v867_v27 = vand.u32 2147483648, %v3057_v4  ;;  %v3069_v17 = vadd.f32 1.0, %v2288_v8  ;;  %vm848_vm15 = vmor %vm846_vm5, %vm847_vm10 }
  0xea   :  { %v2292_v23 = vpop.eup %2291  ;;  %v1083_v26 = vsub.f32 1.0, %v1082_v56  ;;  %vm1087_vm12 = vweird.f32 %v2290_v12  ;;  %vm3072_vm13 = vcmp.eq.f32.partialorder %v1330_v34, 8.507059e+37  ;;  %v1333_v32 = vor.u32 1.1754944e-38, %v1332_v14 }
  0xeb   :  { %v2294_v30 = vpop.eup %2293  ;;  %v845_v31 = vadd.f32 %v2284_v18, %v844_v21  ;;  %v1322_v48 = vmul.f32 %v2292_v23, %v3028_v60  ;;  %vm1566_vm14 = vweird.f32 %v3031_v55  ;;  %v1573_v40 = vor.u32 1.1754944e-38, %v1572_v6  ;;  %vm1088_vm3 = vmor %vm1086_vm8, %vm1087_vm12 }
  0xec   :  { %v2296_v15 = vpop.eup %2295  ;;  %v1084_v35 = vmul.f32 %v2290_v12, %v1083_v26  ;;  %v865_v44 = vand.u32 2147483647, %v3057_v4  ;;  %2299 = vrcp.f32 %v3069_v17  ;;  %vm1327_vm0 = vweird.f32 %v2292_v23 }
  0xed   :  { %v849_v7 = vsel %vm848_vm15, %v2284_v18, %v845_v31  ;;  %v1323_v45 = vsub.f32 1.0, %v1322_v48  ;;  %v1562_v28 = vmul.f32 %v2296_v15, %v3031_v55  ;;  %vm3083_vm1 = vcmp.eq.f32.partialorder %v1570_v0, 8.507059e+37  ;;  %v420_v18 = vpop.f32.mrf.mxu1  ;;  %v3143_v31 = vld [vmem:[%s4107_s2] ss:$0 sm:$0xff] }
  0xee   :  { %v854_v10 = vsel %vm3045_vm7, %v853_v11, %v849_v7  ;;  %v1085_v39 = vadd.f32 %v2290_v12, %v1084_v35  ;;  %vm861_vm2 = vweird.f32 %v3057_v4  ;;  %v868_v36 = vor.u32 1.1754944e-38, %v867_v27  ;;  %v2298_v43 = vpop.eup %2297  ;;  %vm1328_vm7 = vmor %vm1326_vm11, %vm1327_vm0 }
  0xef   :  { %v3090_v51 = vadd.f32 1.0, %v2294_v30  ;;  %v1745_v52 = vmul.f32 %v854_v10, %v2869_v41  ;;  %v1324_v42 = vmul.f32 %v2292_v23, %v1323_v45  ;;  %v1563_v53 = vsub.f32 1.0, %v1562_v28  ;;  %v462_v46 = vpop.f32.mrf.mxu2 }
  0xf0   :  { %vm1567_vm4 = vweird.f32 %v2296_v15  ;;  %v1089_v49 = vsel %vm1088_vm3, %v2290_v12, %v1085_v39  ;;  %v857_v54 = vmul.f32 %v2298_v43, %v3057_v4  ;;  %vm3097_vm5 = vcmp.eq.f32.partialorder %v865_v44, 8.507059e+37  ;;  %v382_v44 = vpop.f32.mrf.mxu0 }
  0xf1   :  { %v1105_v57 = vand.u32 2147483647, %v3069_v17  ;;  %v1107_v61 = vand.u32 2147483648, %v3069_v17  ;;  %v1809_v41 = vpack.c.bf16 %v1745_v52, %v1745_v52  ;;  %v1094_v50 = vsel %vm3060_vm9, %v1093_v19, %v1089_v49  ;;  %vm1568_vm10 = vmor %vm1566_vm14, %vm1567_vm4 }
  0xf2   :  { %v1325_v63 = vadd.f32 %v2292_v23, %v1324_v42  ;;  %v1564_v25 = vmul.f32 %v2296_v15, %v1563_v53  ;;  %v2300_v1 = vpop.eup %2299  ;;  %v1761_v37 = vmul.f32 %v1094_v50, %v2957_v58  ;;  %v858_v5 = vsub.f32 1.0, %v857_v54 }
  0xf3   :  { %vm1101_vm8 = vweird.f32 %v3069_v17  ;;  %2301 = vrcp.f32 %v3090_v51  ;;  %1874 = vst.msk [vmem:[%s4108_s3 + $0x10] sm:$0xf] %vm1869_vm6, %v1809_v41  ;;  %vm862_vm9 = vweird.f32 %v2298_v43  ;;  %v1097_v22 = vmul.f32 %v2300_v1, %v3069_v17  ;;  %v502_v41 = vpop.f32.mrf.mxu3 }
  0xf4   :  { %v1329_v33 = vsel %vm1328_vm7, %v2292_v23, %v1325_v63  ;;  %v1565_v8 = vadd.f32 %v2296_v15, %v1564_v25  ;;  %v1825_v58 = vpack.c.bf16 %v1761_v37, %v1761_v37  ;;  %v859_v11 = vmul.f32 %v2298_v43, %v858_v5 }
  0xf5   :  { %v1334_v60 = vsel %vm3072_vm13, %v1333_v32, %v1329_v33  ;;  %vm3121_vm11 = vcmp.eq.f32.partialorder %v1105_v57, 8.507059e+37  ;;  %v1098_v14 = vsub.f32 1.0, %v1097_v22  ;;  %v1108_v56 = vor.u32 1.1754944e-38, %v1107_v61  ;;  %vm863_vm13 = vmor %vm861_vm2, %vm862_vm9  ;;  %v422_v28 = vpop.f32.mrf.mxu1 }
  0xf6   :  { %v1777_v12 = vmul.f32 %v1334_v60, %v2982_v38  ;;  %v1569_v13 = vsel %vm1568_vm10, %v2296_v15, %v1565_v8  ;;  %1890 = vst.msk [vmem:[%s4108_s3 + $0x50] sm:$0xf] %vm1869_vm6, %v1825_v58  ;;  %v860_v19 = vadd.f32 %v2298_v43, %v859_v11  ;;  %vm1102_vm12 = vweird.f32 %v2300_v1 }
  0xf7   :  { %v1574_v55 = vsel %vm3083_vm1, %v1573_v40, %v1569_v13  ;;  %v2159_v6 = vmul.f32 -1.442695, %v3037_v2  ;;  %v1099_v38 = vmul.f32 %v2300_v1, %v1098_v14  ;;  %vm1341_vm14 = vweird.f32 %v3090_v51  ;;  %vm1103_vm15 = vmor %vm1101_vm8, %vm1102_vm12 }
  0xf8   :  { %v1841_v21 = vpack.c.bf16 %v1777_v12, %v1777_v12  ;;  %v1793_v0 = vmul.f32 %v1574_v55, %v2990_v24  ;;  %v1345_v23 = vand.u32 2147483647, %v3090_v51  ;;  %v864_v27 = vsel %vm863_vm13, %v2298_v43, %v860_v19  ;;  %v385_v14 = vpop.f32.mrf.mxu0 }
  0xf9   :  { %v2302_v26 = vpop.eup %2301  ;;  %v1347_v30 = vand.u32 2147483648, %v3090_v51  ;;  %2303 = vpow2.f32 %v2159_v6  ;;  %v3146_v24 = vadd.f32 %v3143_v31, %v380_v62  ;;  %v869_v48 = vsel %vm3097_vm5, %v868_v36, %v864_v27 }
  0xfa   :  { %1906 = vst.msk [vmem:[%s4108_s3 + $0x90] sm:$0xf] %vm1869_vm6, %v1841_v21  ;;  %v1857_v4 = vpack.c.bf16 %v1793_v0, %v1793_v0  ;;  %v1100_v20 = vadd.f32 %v2300_v1, %v1099_v38  ;;  %v1337_v32 = vmul.f32 %v2302_v26, %v3090_v51  ;;  %v1746_v15 = vmul.f32 %v869_v48, %v3001_v59 }
  0xfb   :  { %vm1342_vm0 = vweird.f32 %v2302_v26  ;;  %v2112_v35 = vmul.f32 -1.442695, %v3146_v24  ;;  %v3161_v40 = vadd.f32 %v3143_v31, %v420_v18  ;;  %v3168_v59 = vadd.f32 %v3143_v31, %v460_v47 }
  0xfc   :  { %1922 = vst.msk [vmem:[%s4108_s3 + $0xd0] sm:$0xf] %vm1869_vm6, %v1857_v4  ;;  %v1104_v7 = vsel %vm1103_vm15, %v2300_v1, %v1100_v20  ;;  %v1338_v45 = vsub.f32 1.0, %v1337_v32  ;;  %v3171_v17 = vadd.f32 %v3143_v31, %v500_v16  ;;  %v1810_v10 = vpack.c.bf16 %v1746_v15, %v1746_v15  ;;  %vm1343_vm1 = vmor %vm1341_vm14, %vm1342_vm0 }
  0xfd   :  { %v1109_v39 = vsel %vm3121_vm11, %v1108_v56, %v1104_v7  ;;  %2305 = vpow2.f32 %v2112_v35  ;;  %v2128_v36 = vmul.f32 -1.442695, %v3161_v40  ;;  %v2144_v42 = vmul.f32 -1.442695, %v3168_v59  ;;  %v425_v27 = vpop.f32.mrf.mxu1 }
  0xfe   :  { %v1762_v43 = vmul.f32 %v1109_v39, %v3004_v9  ;;  %v1339_v52 = vmul.f32 %v2302_v26, %v1338_v45  ;;  %v2160_v53 = vmul.f32 -1.442695, %v3171_v17  ;;  %1875 = vst.msk [vmem:[%s4108_s3 + $0x14] sm:$0xf] %vm1869_vm6, %v1810_v10  ;;  %v3184_v54 = vadd.f32 %v3143_v31, %v382_v44 }
  0xff   :  { %v2304_v49 = vpop.eup %2303  ;;  %2307 = vpow2.f32 %v2128_v36  ;;  %v3187_v29 = vadd.f32 %v3143_v31, %v422_v28  ;;  %v3190_v9 = vadd.f32 %v3143_v31, %v462_v46  ;;  %v1348_v50 = vor.u32 1.1754944e-38, %v1347_v30 }
 0x100   :  { %v1826_v57 = vpack.c.bf16 %v1762_v43, %v1762_v43  ;;  %v1340_v61 = vadd.f32 %v2302_v26, %v1339_v52  ;;  %v3192_v62 = vadd.f32 1.0, %v2304_v49  ;;  %2309 = vpow2.f32 %v2144_v42 }
 0x101   :  { %2311 = vpow2.f32 %v2160_v53  ;;  %v2113_v63 = vmul.f32 -1.442695, %v3184_v54  ;;  %vm1346_vm2 = vcmp.eq.f32.partialorder %v1345_v23, 8.507059e+37  ;;  %v2129_v1 = vmul.f32 -1.442695, %v3187_v29 }
 0x102   :  { %1891 = vst.msk [vmem:[%s4108_s3 + $0x54] sm:$0xf] %vm1869_vm6, %v1826_v57  ;;  %v1344_v25 = vsel %vm1343_vm1, %v2302_v26, %v1340_v61  ;;  %2313 = vrcp.f32 %v3192_v62  ;;  %v3205_v51 = vadd.f32 %v3143_v31, %v502_v41  ;;  %v2145_v33 = vmul.f32 -1.442695, %v3190_v9 }
 0x103   :  { %v2306_v18 = vpop.eup %2305  ;;  %v1349_v47 = vsel %vm1346_vm2, %v1348_v50, %v1344_v25  ;;  %2315 = vpow2.f32 %v2113_v63  ;;  %v1585_v60 = vand.u32 2147483647, %v3192_v62  ;;  %v1587_v11 = vand.u32 2147483648, %v3192_v62 }
 0x104   :  { %v1778_v37 = vmul.f32 %v1349_v47, %v3015_v3  ;;  %v3208_v5 = vadd.f32 1.0, %v2306_v18  ;;  %v2161_v3 = vmul.f32 -1.442695, %v3205_v51  ;;  %vm1581_vm3 = vweird.f32 %v3192_v62 }
 0x105   :  { %v2308_v8 = vpop.eup %2307  ;;  %vm3229_vm4 = vcmp.eq.f32.partialorder %v1585_v60, 8.507059e+37  ;;  %v3236_v0 = vadd.f32 %v3143_v31, %v385_v14  ;;  %v1588_v26 = vor.u32 1.1754944e-38, %v1587_v11  ;;  %v3255_v39 = vadd.f32 %v3143_v31, %v425_v27 }
 0x106   :  { %v2310_v22 = vpop.eup %2309  ;;  %v1842_v58 = vpack.c.bf16 %v1778_v37, %v1778_v37  ;;  %2317 = vrcp.f32 %v3208_v5  ;;  %v3214_v12 = vadd.f32 1.0, %v2308_v8  ;;  %v880_v19 = vand.u32 2147483647, %v3208_v5 }
 0x107   :  { %v2312_v34 = vpop.eup %2311  ;;  %v3216_v13 = vadd.f32 1.0, %v2310_v22  ;;  %2319 = vpow2.f32 %v2129_v1  ;;  %v882_v21 = vand.u32 2147483648, %v3208_v5  ;;  %vm876_vm5 = vweird.f32 %v3208_v5 }
 0x108   :  { %v2314_v56 = vpop.eup %2313  ;;  %1907 = vst.msk [vmem:[%s4108_s3 + $0x94] sm:$0xf] %vm1869_vm6, %v1842_v58  ;;  %v3223_v16 = vadd.f32 1.0, %v2312_v34  ;;  %2321 = vpow2.f32 %v2145_v33  ;;  %v1120_v4 = vand.u32 2147483647, %v3214_v12  ;;  %v1122_v48 = vand.u32 2147483648, %v3214_v12 }
 0x109   :  { %v1577_v55 = vmul.f32 %v2314_v56, %v3192_v62  ;;  %2323 = vrcp.f32 %v3214_v12  ;;  %v2316_v38 = vpop.eup %2315  ;;  %v1362_v20 = vand.u32 2147483648, %v3216_v13  ;;  %vm1582_vm7 = vweird.f32 %v2314_v56 }
 0x10a   :  { %2325 = vrcp.f32 %v3216_v13  ;;  %vm3244_vm8 = vcmp.eq.f32.partialorder %v880_v19, 8.507059e+37  ;;  %v1360_v7 = vand.u32 2147483647, %v3216_v13  ;;  %v883_v28 = vor.u32 1.1754944e-38, %v882_v21  ;;  %vm1583_vm11 = vmor %vm1581_vm3, %vm1582_vm7 }
 0x10b   :  { %v1578_v23 = vsub.f32 1.0, %v1577_v55  ;;  %2327 = vpow2.f32 %v2161_v3  ;;  %v3249_v46 = vadd.f32 1.0, %v2316_v38  ;;  %v3252_v10 = vmul.f32 -1.442695, %v3236_v0 }
 0x10c   :  { %v2318_v30 = vpop.eup %2317  ;;  %2329 = vrcp.f32 %v3223_v16  ;;  %vm1116_vm9 = vweird.f32 %v3214_v12  ;;  %vm1356_vm10 = vweird.f32 %v3216_v13  ;;  %vm3263_vm13 = vcmp.eq.f32.partialorder %v1120_v4, 8.507059e+37 }
 0x10d   :  { %v2320_v32 = vpop.eup %2319  ;;  %v1579_v15 = vmul.f32 %v2314_v56, %v1578_v23  ;;  %v872_v35 = vmul.f32 %v2318_v30, %v3208_v5  ;;  %vm877_vm12 = vweird.f32 %v2318_v30  ;;  %v1123_v57 = vor.u32 1.1754944e-38, %v1122_v48 }
 0x10e   :  { %v2322_v45 = vpop.eup %2321  ;;  %v1363_v61 = vor.u32 1.1754944e-38, %v1362_v20  ;;  %vm3270_vm14 = vcmp.eq.f32.partialorder %v1360_v7, 8.507059e+37  ;;  %vm1596_vm15 = vweird.f32 %v3223_v16  ;;  %v1600_v62 = vand.u32 2147483647, %v3223_v16  ;;  %vm878_vm0 = vmor %vm876_vm5, %vm877_vm12 }
 0x10f   :  { %v2324_v36 = vpop.eup %2323  ;;  %v1580_v43 = vadd.f32 %v2314_v56, %v1579_v15  ;;  %v873_v52 = vsub.f32 1.0, %v872_v35  ;;  %2331 = vrcp.f32 %v3249_v46  ;;  %v3279_v33 = vadd.f32 1.0, %v2320_v32 }
 0x110   :  { %v2326_v42 = vpop.eup %2325  ;;  %v1112_v53 = vmul.f32 %v2324_v36, %v3214_v12  ;;  %vm1117_vm1 = vweird.f32 %v2324_v36  ;;  %v1602_v34 = vand.u32 2147483648, %v3223_v16  ;;  %v895_v6 = vand.u32 2147483647, %v3249_v46 }
 0x111   :  { %v3267_v41 = vpop.eup %2327  ;;  %v1584_v50 = vsel %vm1583_vm11, %v2314_v56, %v1580_v43  ;;  %v874_v63 = vmul.f32 %v2318_v30, %v873_v52  ;;  %v1352_v25 = vmul.f32 %v2326_v42, %v3216_v13  ;;  %vm1357_vm2 = vweird.f32 %v2326_v42 }
 0x112   :  { %v2330_v47 = vpop.eup %2329  ;;  %v1589_v1 = vsel %vm3229_vm4, %v1588_v26, %v1584_v50  ;;  %v1113_v37 = vsub.f32 1.0, %v1112_v53  ;;  %vm1118_vm4 = vmor %vm1116_vm9, %vm1117_vm1  ;;  %2333 = vrcp.f32 %v3279_v33  ;;  %vm3301_vm7 = vcmp.eq.f32.partialorder %v1600_v62, 8.507059e+37  ;;  %v465_v50 = vpop.f32.mrf.mxu2 }
 0x113   :  { %v1794_v8 = vmul.f32 %v1589_v1, %v3037_v2  ;;  %v875_v22 = vadd.f32 %v2318_v30, %v874_v63  ;;  %v1353_v58 = vsub.f32 1.0, %v1352_v25  ;;  %v1592_v60 = vmul.f32 %v2330_v47, %v3223_v16  ;;  %vm1358_vm5 = vmor %vm1356_vm10, %vm1357_vm2 }
 0x114   :  { %v1114_v11 = vmul.f32 %v2324_v36, %v1113_v37  ;;  %vm1597_vm3 = vweird.f32 %v2330_v47  ;;  %v3305_v4 = vadd.f32 1.0, %v2322_v45  ;;  %v897_v35 = vand.u32 2147483648, %v3249_v46 }
 0x115   :  { %v1858_v3 = vpack.c.bf16 %v1794_v8, %v1794_v8  ;;  %v879_v14 = vsel %vm878_vm0, %v2318_v30, %v875_v22  ;;  %v1354_v56 = vmul.f32 %v2326_v42, %v1353_v58  ;;  %v1593_v55 = vsub.f32 1.0, %v1592_v60  ;;  %v2332_v23 = vpop.eup %2331  ;;  %v505_v22 = vpop.f32.mrf.mxu3 }
 0x116   :  { %v884_v2 = vsel %vm3244_vm8, %v883_v28, %v879_v14  ;;  %v1115_v19 = vadd.f32 %v2324_v36, %v1114_v11  ;;  %v1603_v30 = vor.u32 1.1754944e-38, %v1602_v34  ;;  %vm1598_vm8 = vmor %vm1596_vm15, %vm1597_vm3  ;;  %v887_v13 = vmul.f32 %v2332_v23, %v3249_v46  ;;  %v387_v58 = vpop.f32.mrf.mxu0 }
 0x117   :  { %1923 = vst.msk [vmem:[%s4108_s3 + $0xd4] sm:$0xf] %vm1869_vm6, %v1858_v3  ;;  %v1747_v5 = vmul.f32 %v884_v2, %v3146_v24  ;;  %v1355_v21 = vadd.f32 %v2326_v42, %v1354_v56  ;;  %v1594_v38 = vmul.f32 %v2330_v47, %v1593_v55  ;;  %vm891_vm9 = vweird.f32 %v3249_v46 }
 0x118   :  { %v1119_v26 = vsel %vm1118_vm4, %v2324_v36, %v1115_v19  ;;  %vm3323_vm10 = vcmp.eq.f32.partialorder %v895_v6, 8.507059e+37  ;;  %v888_v28 = vsub.f32 1.0, %v887_v13  ;;  %2335 = vrcp.f32 %v3305_v4  ;;  %v2334_v36 = vpop.eup %2333 }
 0x119   :  { %v1811_v24 = vpack.c.bf16 %v1747_v5, %v1747_v5  ;;  %v1124_v12 = vsel %vm3263_vm13, %v1123_v57, %v1119_v26  ;;  %v1359_v48 = vsel %vm1358_vm5, %v2326_v42, %v1355_v21  ;;  %v1595_v20 = vadd.f32 %v2330_v47, %v1594_v38  ;;  %v427_v38 = vpop.f32.mrf.mxu1 }
 0x11a   :  { %v1763_v32 = vmul.f32 %v1124_v12, %v3161_v40  ;;  %v1364_v15 = vsel %vm3270_vm14, %v1363_v61, %v1359_v48  ;;  %v1137_v42 = vand.u32 2147483648, %v3279_v33  ;;  %v889_v53 = vmul.f32 %v2332_v23, %v888_v28 }
 0x11b   :  { %1876 = vst.msk [vmem:[%s4108_s3 + $0x18] sm:$0xf] %vm1869_vm6, %v1811_v24  ;;  %v1779_v44 = vmul.f32 %v1364_v15, %v3168_v59  ;;  %v1599_v7 = vsel %vm1598_vm8, %v2330_v47, %v1595_v20  ;;  %v1135_v59 = vand.u32 2147483647, %v3279_v33  ;;  %vm892_vm11 = vweird.f32 %v2332_v23 }
 0x11c   :  { %v1827_v16 = vpack.c.bf16 %v1763_v32, %v1763_v32  ;;  %v1604_v45 = vsel %vm3301_vm7, %v1603_v30, %v1599_v7  ;;  %v898_v49 = vor.u32 1.1754944e-38, %v897_v35  ;;  %v1127_v57 = vmul.f32 %v2334_v36, %v3279_v33  ;;  %vm893_vm13 = vmor %vm891_vm9, %vm892_vm11 }
 0x11d   :  { %v1843_v43 = vpack.c.bf16 %v1779_v44, %v1779_v44  ;;  %v1795_v52 = vmul.f32 %v1604_v45, %v3171_v17  ;;  %vm1131_vm12 = vweird.f32 %v3279_v33  ;;  %v3344_v61 = vadd.f32 1.0, %v3267_v41  ;;  %v507_v41 = vpop.f32.mrf.mxu3 }
 0x11e   :  { %1892 = vst.msk [vmem:[%s4108_s3 + $0x58] sm:$0xf] %vm1869_vm6, %v1827_v16  ;;  %2337 = vpow2.f32 %v3252_v10  ;;  %v890_v63 = vadd.f32 %v2332_v23, %v889_v53  ;;  %v1128_v25 = vsub.f32 1.0, %v1127_v57  ;;  %v1375_v18 = vand.u32 2147483647, %v3305_v4  ;;  %v2336_v47 = vpop.eup %2335 }
 0x11f   :  { %1908 = vst.msk [vmem:[%s4108_s3 + $0x98] sm:$0xf] %vm1869_vm6, %v1843_v43  ;;  %v1859_v17 = vpack.c.bf16 %v1795_v52, %v1795_v52  ;;  %v2130_v62 = vmul.f32 -1.442695, %v3255_v39  ;;  %vm1132_vm14 = vweird.f32 %v2334_v36  ;;  %vm3355_vm15 = vcmp.eq.f32.partialorder %v1135_v59, 8.507059e+37 }
 0x120   :  { %v1138_v10 = vor.u32 1.1754944e-38, %v1137_v42  ;;  %2339 = vrcp.f32 %v3344_v61  ;;  %v894_v1 = vsel %vm893_vm13, %v2332_v23, %v890_v63  ;;  %v1129_v37 = vmul.f32 %v2334_v36, %v1128_v25  ;;  %vm1133_vm2 = vmor %vm1131_vm12, %vm1132_vm14 }
 0x121   :  { %1924 = vst.msk [vmem:[%s4108_s3 + $0xd8] sm:$0xf] %vm1869_vm6, %v1859_v17  ;;  %2341 = vpow2.f32 %v2130_v62  ;;  %v3361_v8 = vadd.f32 %v3143_v31, %v465_v50  ;;  %v899_v46 = vsel %vm3323_vm10, %v898_v49, %v894_v1  ;;  %v1367_v60 = vmul.f32 %v2336_v47, %v3305_v4  ;;  %v467_v17 = vpop.f32.mrf.mxu2 }
 0x122   :  { %vm1371_vm0 = vweird.f32 %v3305_v4  ;;  %v1377_v11 = vand.u32 2147483648, %v3305_v4  ;;  %v1748_v34 = vmul.f32 %v899_v46, %v3184_v54  ;;  %v1130_v3 = vadd.f32 %v2334_v36, %v1129_v37 }
 0x123   :  { %vm3369_vm1 = vcmp.eq.f32.partialorder %v1375_v18, 8.507059e+37  ;;  %v2146_v56 = vmul.f32 -1.442695, %v3361_v8  ;;  %v1368_v2 = vsub.f32 1.0, %v1367_v60  ;;  %vm1372_vm3 = vweird.f32 %v2336_v47 }
 0x124   :  { %v2338_v55 = vpop.eup %2337  ;;  %v3378_v19 = vadd.f32 %v3143_v31, %v505_v22  ;;  %v3381_v6 = vadd.f32 %v3143_v31, %v387_v58  ;;  %v1812_v54 = vpack.c.bf16 %v1748_v34, %v1748_v34  ;;  %v1134_v5 = vsel %vm1133_vm2, %v2334_v36, %v1130_v3  ;;  %vm1373_vm4 = vmor %vm1371_vm0, %vm1372_vm3 }
 0x125   :  { %v3383_v21 = vadd.f32 1.0, %v2338_v55  ;;  %2343 = vpow2.f32 %v2146_v56  ;;  %v1139_v26 = vsel %vm3355_vm15, %v1138_v10, %v1134_v5  ;;  %v1369_v33 = vmul.f32 %v2336_v47, %v1368_v2 }
 0x126   :  { %v2340_v23 = vpop.eup %2339  ;;  %v2162_v27 = vmul.f32 -1.442695, %v3378_v19  ;;  %v2115_v30 = vmul.f32 -1.442695, %v3381_v6  ;;  %1877 = vst.msk [vmem:[%s4108_s3 + $0x1c] sm:$0xf] %vm1869_vm6, %v1812_v54  ;;  %v1764_v12 = vmul.f32 %v1139_v26, %v3187_v29  ;;  %v3399_v35 = vadd.f32 %v3143_v31, %v427_v38 }
 0x127   :  { %v2342_v24 = vpop.eup %2341  ;;  %v1378_v48 = vor.u32 1.1754944e-38, %v1377_v11  ;;  %v1607_v20 = vmul.f32 %v2340_v23, %v3344_v61  ;;  %2345 = vrcp.f32 %v3383_v21  ;;  %v1370_v32 = vadd.f32 %v2336_v47, %v1369_v33 }
 0x128   :  { %v1615_v15 = vand.u32 2147483647, %v3344_v61  ;;  %v1617_v13 = vand.u32 2147483648, %v3344_v61  ;;  %v1828_v44 = vpack.c.bf16 %v1764_v12, %v1764_v12  ;;  %v3404_v29 = vadd.f32 1.0, %v2342_v24  ;;  %v390_v12 = vpop.f32.mrf.mxu0 }
 0x129   :  { %v1608_v7 = vsub.f32 1.0, %v1607_v20  ;;  %2347 = vpow2.f32 %v2162_v27  ;;  %v1374_v40 = vsel %vm1373_vm4, %v2336_v47, %v1370_v32  ;;  %v910_v16 = vand.u32 2147483647, %v3383_v21 }
 0x12a   :  { %v912_v45 = vand.u32 2147483648, %v3383_v21  ;;  %2349 = vpow2.f32 %v2115_v30  ;;  %1893 = vst.msk [vmem:[%s4108_s3 + $0x5c] sm:$0xf] %vm1869_vm6, %v1828_v44  ;;  %v1379_v4 = vsel %vm3369_vm1, %v1378_v48, %v1374_v40  ;;  %vm1612_vm5 = vweird.f32 %v2340_v23 }
 0x12b   :  { %v2344_v28 = vpop.eup %2343  ;;  %v1609_v36 = vmul.f32 %v2340_v23, %v1608_v7  ;;  %2351 = vrcp.f32 %v3404_v29  ;;  %v1780_v43 = vmul.f32 %v1379_v4, %v3190_v9  ;;  %vm1611_vm7 = vweird.f32 %v3344_v61 }
 0x12c   :  { %vm3417_vm8 = vcmp.eq.f32.partialorder %v1615_v15, 8.507059e+37  ;;  %v3421_v59 = vadd.f32 1.0, %v2344_v28  ;;  %v1618_v49 = vor.u32 1.1754944e-38, %v1617_v13  ;;  %vm906_vm9 = vweird.f32 %v3383_v21  ;;  %vm1613_vm10 = vmor %vm1611_vm7, %vm1612_vm5 }
 0x12d   :  { %v2346_v42 = vpop.eup %2345  ;;  %v1610_v53 = vadd.f32 %v2340_v23, %v1609_v36  ;;  %v2131_v57 = vmul.f32 -1.442695, %v3399_v35  ;;  %v1844_v50 = vpack.c.bf16 %v1780_v43, %v1780_v43  ;;  %vm3426_vm11 = vcmp.eq.f32.partialorder %v910_v16, 8.507059e+37 }
 0x12e   :  { %v902_v9 = vmul.f32 %v2346_v42, %v3383_v21  ;;  %v913_v63 = vor.u32 1.1754944e-38, %v912_v45  ;;  %vm1146_vm12 = vweird.f32 %v3404_v29  ;;  %v1150_v62 = vand.u32 2147483647, %v3404_v29 }
 0x12f   :  { %v2348_v25 = vpop.eup %2347  ;;  %v1614_v18 = vsel %vm1613_vm10, %v2340_v23, %v1610_v53  ;;  %2353 = vrcp.f32 %v3421_v59  ;;  %1909 = vst.msk [vmem:[%s4108_s3 + $0x9c] sm:$0xf] %vm1869_vm6, %v1844_v50  ;;  %v1152_v37 = vand.u32 2147483648, %v3404_v29  ;;  %v3441_v22 = vadd.f32 %v3143_v31, %v467_v17 }
 0x130   :  { %v2350_v10 = vpop.eup %2349  ;;  %v1619_v47 = vsel %vm3417_vm8, %v1618_v49, %v1614_v18  ;;  %v903_v1 = vsub.f32 1.0, %v902_v9  ;;  %v3444_v60 = vadd.f32 1.0, %v2348_v25  ;;  %2355 = vpow2.f32 %v2131_v57  ;;  %v430_v18 = vpop.f32.mrf.mxu1 }
 0x131   :  { %v2352_v58 = vpop.eup %2351  ;;  %v1796_v46 = vmul.f32 %v1619_v47, %v3205_v51  ;;  %v3446_v11 = vadd.f32 1.0, %v2350_v10  ;;  %vm907_vm13 = vweird.f32 %v2346_v42  ;;  %v3450_v14 = vadd.f32 %v3143_v31, %v507_v41  ;;  %v470_v47 = vpop.f32.mrf.mxu2 }
 0x132   :  { %v904_v34 = vmul.f32 %v2346_v42, %v903_v1  ;;  %v1142_v3 = vmul.f32 %v2352_v58, %v3404_v29  ;;  %v1390_v55 = vand.u32 2147483647, %v3421_v59  ;;  %v1392_v2 = vand.u32 2147483648, %v3421_v59  ;;  %vm908_vm15 = vmor %vm906_vm9, %vm907_vm13  ;;  %v510_v1 = vpop.f32.mrf.mxu3 }
 0x133   :  { %v1860_v56 = vpack.c.bf16 %v1796_v46, %v1796_v46  ;;  %2357 = vrcp.f32 %v3444_v60  ;;  %vm3455_vm14 = vcmp.eq.f32.partialorder %v1150_v62, 8.507059e+37  ;;  %v1153_v38 = vor.u32 1.1754944e-38, %v1152_v37 }
 0x134   :  { %v905_v51 = vadd.f32 %v2346_v42, %v904_v34  ;;  %v1143_v54 = vsub.f32 1.0, %v1142_v3  ;;  %vm1147_vm0 = vweird.f32 %v2352_v58  ;;  %vm1386_vm1 = vweird.f32 %v3421_v59 }
 0x135   :  { %v2354_v23 = vpop.eup %2353  ;;  %1925 = vst.msk [vmem:[%s4108_s3 + $0xdc] sm:$0xf] %vm1869_vm6, %v1860_v56  ;;  %v1632_v26 = vand.u32 2147483648, %v3444_v60  ;;  %2359 = vrcp.f32 %v3446_v11  ;;  %v1630_v24 = vand.u32 2147483647, %v3444_v60  ;;  %vm3472_vm2 = vcmp.eq.f32.partialorder %v1390_v55, 8.507059e+37  ;;  %vm1148_vm4 = vmor %vm1146_vm12, %vm1147_vm0  ;;  %v392_v56 = vpop.f32.mrf.mxu0 }
 0x136   :  { %v909_v33 = vsel %vm908_vm15, %v2346_v42, %v905_v51  ;;  %v1144_v27 = vmul.f32 %v2352_v58, %v1143_v54  ;;  %v1382_v30 = vmul.f32 %v2354_v23, %v3421_v59  ;;  %v2356_v48 = vpop.eup %2355  ;;  %v1393_v32 = vor.u32 1.1754944e-38, %v1392_v2 }
 0x137   :  { %v914_v20 = vsel %vm3426_vm11, %v913_v63, %v909_v33  ;;  %v925_v15 = vand.u32 2147483647, %v3446_v11  ;;  %vm1626_vm3 = vweird.f32 %v3444_v60  ;;  %v927_v40 = vand.u32 2147483648, %v3446_v11 }
 0x138   :  { %v1749_v13 = vmul.f32 %v914_v20, %v3236_v0  ;;  %v1145_v44 = vadd.f32 %v2352_v58, %v1144_v27  ;;  %v1383_v7 = vsub.f32 1.0, %v1382_v30  ;;  %vm1387_vm5 = vweird.f32 %v2354_v23 }
 0x139   :  { %v2358_v16 = vpop.eup %2357  ;;  %v1633_v45 = vor.u32 1.1754944e-38, %v1632_v26  ;;  %v3483_v28 = vadd.f32 1.0, %v2356_v48  ;;  %v2147_v4 = vmul.f32 -1.442695, %v3441_v22  ;;  %vm3487_vm7 = vcmp.eq.f32.partialorder %v1630_v24, 8.507059e+37  ;;  %vm1388_vm9 = vmor %vm1386_vm1, %vm1387_vm5 }
 0x13a   :  { %v1813_v36 = vpack.c.bf16 %v1749_v13, %v1749_v13  ;;  %v1149_v43 = vsel %vm1148_vm4, %v2352_v58, %v1145_v44  ;;  %v1384_v0 = vmul.f32 %v2354_v23, %v1383_v7  ;;  %v1622_v52 = vmul.f32 %v2358_v16, %v3444_v60 }
 0x13b   :  { %vm921_vm8 = vweird.f32 %v3446_v11  ;;  %v2360_v53 = vpop.eup %2359  ;;  %v1154_v29 = vsel %vm3455_vm14, %v1153_v38, %v1149_v43  ;;  %2361 = vrcp.f32 %v3483_v28  ;;  %v2163_v49 = vmul.f32 -1.442695, %v3450_v14 }
 0x13c   :  { %v3497_v57 = vadd.f32 %v3143_v31, %v390_v12  ;;  %1878 = vst.msk [vmem:[%s4108_s3 + $0x20] sm:$0xf] %vm1869_vm6, %v1813_v36  ;;  %v1765_v17 = vmul.f32 %v1154_v29, %v3255_v39  ;;  %v1385_v50 = vadd.f32 %v2354_v23, %v1384_v0  ;;  %v1623_v9 = vsub.f32 1.0, %v1622_v52 }
 0x13d   :  { %v917_v61 = vmul.f32 %v2360_v53, %v3446_v11  ;;  %vm1627_vm10 = vweird.f32 %v2358_v16  ;;  %vm3508_vm11 = vcmp.eq.f32.partialorder %v925_v15, 8.507059e+37  ;;  %v928_v25 = vor.u32 1.1754944e-38, %v927_v40 }
 0x13e   :  { %2363 = vpow2.f32 %v2147_v4  ;;  %v1829_v62 = vpack.c.bf16 %v1765_v17, %v1765_v17  ;;  %v1389_v41 = vsel %vm1388_vm9, %v2354_v23, %v1385_v50  ;;  %v1624_v10 = vmul.f32 %v2358_v16, %v1623_v9  ;;  %vm1628_vm13 = vmor %vm1626_vm3, %vm1627_vm10 }
 0x13f   :  { %v918_v39 = vsub.f32 1.0, %v917_v61  ;;  %v1394_v37 = vsel %vm3472_vm2, %v1393_v32, %v1389_v41  ;;  %vm922_vm12 = vweird.f32 %v2360_v53  ;;  %v1165_v59 = vand.u32 2147483647, %v3483_v28 }
 0x140   :  { %2365 = vpow2.f32 %v2163_v49  ;;  %1894 = vst.msk [vmem:[%s4108_s3 + $0x60] sm:$0xf] %vm1869_vm6, %v1829_v62  ;;  %v1781_v58 = vmul.f32 %v1394_v37, %v3361_v8  ;;  %v1625_v46 = vadd.f32 %v2358_v16, %v1624_v10  ;;  %v2116_v3 = vmul.f32 -1.442695, %v3497_v57  ;;  %vm923_vm14 = vmor %vm921_vm8, %vm922_vm12 }
 0x141   :  { %v919_v34 = vmul.f32 %v2360_v53, %v918_v39  ;;  %v2362_v55 = vpop.eup %2361  ;;  %v1167_v2 = vand.u32 2147483648, %v3483_v28  ;;  %v3526_v51 = vadd.f32 %v3143_v31, %v430_v18  ;;  %v3529_v54 = vadd.f32 %v3143_v31, %v470_v47 }
 0x142   :  { %v3532_v8 = vadd.f32 %v3143_v31, %v510_v1  ;;  %v1845_v5 = vpack.c.bf16 %v1781_v58, %v1781_v58  ;;  %v1629_v38 = vsel %vm1628_vm13, %v2358_v16, %v1625_v46  ;;  %v1157_v26 = vmul.f32 %v2362_v55, %v3483_v28 }
 0x143   :  { %v920_v23 = vadd.f32 %v2360_v53, %v919_v34  ;;  %v1634_v60 = vsel %vm3487_vm7, %v1633_v45, %v1629_v38  ;;  %2367 = vpow2.f32 %v2116_v3  ;;  %v2132_v27 = vmul.f32 -1.442695, %v3526_v51 }
 0x144   :  { %v2364_v33 = vpop.eup %2363  ;;  %v3542_v30 = vadd.f32 %v3143_v31, %v392_v56  ;;  %1910 = vst.msk [vmem:[%s4108_s3 + $0xa0] sm:$0xf] %vm1869_vm6, %v1845_v5  ;;  %v1797_v24 = vmul.f32 %v1634_v60, %v3378_v19  ;;  %v1158_v48 = vsub.f32 1.0, %v1157_v26  ;;  %vm1162_vm15 = vweird.f32 %v2362_v55 }
 0x145   :  { %v924_v12 = vsel %vm923_vm14, %v2360_v53, %v920_v23  ;;  %v3549_v20 = vadd.f32 1.0, %v2364_v33  ;;  %2369 = vpow2.f32 %v2132_v27  ;;  %v2148_v32 = vmul.f32 -1.442695, %v3529_v54  ;;  %v432_v53 = vpop.f32.mrf.mxu1 }
 0x146   :  { %v2366_v21 = vpop.eup %2365  ;;  %v929_v11 = vsel %vm3508_vm11, %v928_v25, %v924_v12  ;;  %v1861_v15 = vpack.c.bf16 %v1797_v24, %v1797_v24  ;;  %v1159_v44 = vmul.f32 %v2362_v55, %v1158_v48  ;;  %v2164_v19 = vmul.f32 -1.442695, %v3532_v8  ;;  %v472_v25 = vpop.f32.mrf.mxu2 }
 0x147   :  { %v1750_v13 = vmul.f32 %v929_v11, %v3381_v6  ;;  %2371 = vrcp.f32 %v3549_v20  ;;  %v3556_v7 = vadd.f32 1.0, %v2366_v21  ;;  %vm1161_vm0 = vweird.f32 %v3483_v28 }
 0x148   :  { %1926 = vst.msk [vmem:[%s4108_s3 + $0xe0] sm:$0xf] %vm1869_vm6, %v1861_v15  ;;  %v1160_v16 = vadd.f32 %v2362_v55, %v1159_v44  ;;  %2373 = vpow2.f32 %v2148_v32  ;;  %vm1163_vm1 = vmor %vm1161_vm0, %vm1162_vm15  ;;  %v1168_v6 = vor.u32 1.1754944e-38, %v1167_v2  ;;  %v1405_v4 = vand.u32 2147483647, %v3549_v20 }
 0x149   :  { %v1814_v40 = vpack.c.bf16 %v1750_v13, %v1750_v13  ;;  %v2368_v45 = vpop.eup %2367  ;;  %v1407_v36 = vand.u32 2147483648, %v3549_v20  ;;  %2375 = vrcp.f32 %v3556_v7  ;;  %vm1166_vm2 = vcmp.eq.f32.partialorder %v1165_v59, 8.507059e+37 }
 0x14a   :  { %v1164_v43 = vsel %vm1163_vm1, %v2362_v55, %v1160_v16  ;;  %v3572_v0 = vadd.f32 1.0, %v2368_v45  ;;  %v2117_v28 = vmul.f32 -1.442695, %v3542_v30  ;;  %2377 = vpow2.f32 %v2164_v19 }
 0x14b   :  { %1879 = vst.msk [vmem:[%s4108_s3 + $0x24] sm:$0xf] %vm1869_vm6, %v1814_v40  ;;  %v2370_v52 = vpop.eup %2369  ;;  %v1169_v42 = vsel %vm1166_vm2, %v1168_v6, %v1164_v43  ;;  %vm1401_vm3 = vweird.f32 %v3549_v20  ;;  %v1645_v17 = vand.u32 2147483647, %v3556_v7  ;;  %vm3580_vm4 = vcmp.eq.f32.partialorder %v1405_v4, 8.507059e+37 }
 0x14c   :  { %v1766_v49 = vmul.f32 %v1169_v42, %v3399_v35  ;;  %2379 = vrcp.f32 %v3572_v0  ;;  %v1408_v61 = vor.u32 1.1754944e-38, %v1407_v36  ;;  %v1647_v63 = vand.u32 2147483648, %v3556_v7 }
 0x14d   :  { %v2372_v29 = vpop.eup %2371  ;;  %vm1641_vm5 = vweird.f32 %v3556_v7  ;;  %v3586_v35 = vadd.f32 1.0, %v2370_v52  ;;  %2381 = vpow2.f32 %v2117_v28  ;;  %v3589_v41 = vadd.f32 %v3143_v31, %v432_v53 }
 0x14e   :  { %v1397_v50 = vmul.f32 %v2372_v29, %v3549_v20  ;;  %v2374_v18 = vpop.eup %2373  ;;  %v1830_v62 = vpack.c.bf16 %v1766_v49, %v1766_v49  ;;  %v940_v47 = vand.u32 2147483647, %v3572_v0  ;;  %v942_v1 = vand.u32 2147483648, %v3572_v0  ;;  %v512_v49 = vpop.f32.mrf.mxu3 }
 0x14f   :  { %v2376_v10 = vpop.eup %2375  ;;  %v3593_v37 = vadd.f32 1.0, %v2374_v18  ;;  %vm3600_vm7 = vcmp.eq.f32.partialorder %v1645_v17, 8.507059e+37  ;;  %2383 = vrcp.f32 %v3586_v35  ;;  %v3606_v46 = vadd.f32 %v3143_v31, %v472_v25 }
 0x150   :  { %v1398_v39 = vsub.f32 1.0, %v1397_v50  ;;  %1895 = vst.msk [vmem:[%s4108_s3 + $0x64] sm:$0xf] %vm1869_vm6, %v1830_v62  ;;  %v1637_v59 = vmul.f32 %v2376_v10, %v3556_v7  ;;  %v2378_v34 = vpop.eup %2377  ;;  %vm1402_vm8 = vweird.f32 %v2372_v29  ;;  %v1648_v56 = vor.u32 1.1754944e-38, %v1647_v63 }
 0x151   :  { %vm936_vm9 = vweird.f32 %v3572_v0  ;;  %vm1642_vm10 = vweird.f32 %v2376_v10  ;;  %2385 = vrcp.f32 %v3593_v37  ;;  %v2133_v5 = vmul.f32 -1.442695, %v3589_v41  ;;  %vm1403_vm13 = vmor %vm1401_vm3, %vm1402_vm8 }
 0x152   :  { %v1399_v3 = vmul.f32 %v2372_v29, %v1398_v39  ;;  %v2380_v55 = vpop.eup %2379  ;;  %v1638_v2 = vsub.f32 1.0, %v1637_v59  ;;  %vm3612_vm11 = vcmp.eq.f32.partialorder %v940_v47, 8.507059e+37  ;;  %v943_v31 = vor.u32 1.1754944e-38, %v942_v1  ;;  %vm1643_vm15 = vmor %vm1641_vm5, %vm1642_vm10 }
 0x153   :  { %v932_v23 = vmul.f32 %v2380_v55, %v3572_v0  ;;  %vm1176_vm12 = vweird.f32 %v3586_v35  ;;  %v2382_v33 = vpop.eup %2381  ;;  %v1180_v27 = vand.u32 2147483647, %v3586_v35  ;;  %v1182_v24 = vand.u32 2147483648, %v3586_v35 }
 0x154   :  { %v1400_v38 = vadd.f32 %v2372_v29, %v1399_v3  ;;  %v1639_v60 = vmul.f32 %v2376_v10, %v1638_v2  ;;  %v1420_v12 = vand.u32 2147483647, %v3593_v37  ;;  %vm937_vm14 = vweird.f32 %v2380_v55 }
 0x155   :  { %v933_v21 = vsub.f32 1.0, %v932_v23  ;;  %v3622_v11 = vadd.f32 1.0, %v2378_v34  ;;  %v2384_v32 = vpop.eup %2383  ;;  %v1422_v20 = vand.u32 2147483648, %v3593_v37  ;;  %2387 = vpow2.f32 %v2133_v5  ;;  %vm938_vm2 = vmor %vm936_vm9, %vm937_vm14 }
 0x156   :  { %v1404_v48 = vsel %vm1403_vm13, %v2372_v29, %v1400_v38  ;;  %v1640_v13 = vadd.f32 %v2376_v10, %v1639_v60  ;;  %v1172_v40 = vmul.f32 %v2384_v32, %v3586_v35  ;;  %v3632_v16 = vadd.f32 1.0, %v2382_v33 }
 0x157   :  { %v1409_v15 = vsel %vm3580_vm4, %v1408_v61, %v1404_v48  ;;  %v934_v19 = vmul.f32 %v2380_v55, %v933_v21  ;;  %v2386_v45 = vpop.eup %2385  ;;  %vm3634_vm0 = vcmp.eq.f32.partialorder %v1180_v27, 8.507059e+37  ;;  %v1183_v36 = vor.u32 1.1754944e-38, %v1182_v24  ;;  %v475_v48 = vpop.f32.mrf.mxu2 }
 0x158   :  { %v1782_v44 = vmul.f32 %v1409_v15, %v3441_v22  ;;  %v1644_v6 = vsel %vm1643_vm15, %v2376_v10, %v1640_v13  ;;  %vm1416_vm1 = vweird.f32 %v3593_v37  ;;  %2389 = vrcp.f32 %v3622_v11  ;;  %v515_v13 = vpop.f32.mrf.mxu3 }
 0x159   :  { %v1649_v7 = vsel %vm3600_vm7, %v1648_v56, %v1644_v6  ;;  %v935_v43 = vadd.f32 %v2380_v55, %v934_v19  ;;  %v1173_v28 = vsub.f32 1.0, %v1172_v40  ;;  %vm1177_vm3 = vweird.f32 %v2384_v32  ;;  %v395_v56 = vpop.f32.mrf.mxu0  ;;  %v3708_v19 = vld [vmem:[%s4107_s2] ss:$0 sm:$0xff] }
 0x15a   :  { %v1846_v22 = vpack.c.bf16 %v1782_v44, %v1782_v44  ;;  %v1798_v52 = vmul.f32 %v1649_v7, %v3450_v14  ;;  %v1412_v42 = vmul.f32 %v2386_v45, %v3593_v37  ;;  %vm3647_vm4 = vcmp.eq.f32.partialorder %v1420_v12, 8.507059e+37  ;;  %vm1178_vm8 = vmor %vm1176_vm12, %vm1177_vm3  ;;  %v435_v37 = vpop.f32.mrf.mxu1 }
 0x15b   :  { %v1423_v29 = vor.u32 1.1754944e-38, %v1422_v20  ;;  %v939_v17 = vsel %vm938_vm2, %v2380_v55, %v935_v43  ;;  %v1174_v14 = vmul.f32 %v2384_v32, %v1173_v28  ;;  %v1660_v50 = vand.u32 2147483647, %v3622_v11  ;;  %v2388_v0 = vpop.eup %2387 }
 0x15c   :  { %1911 = vst.msk [vmem:[%s4108_s3 + $0xa4] sm:$0xf] %vm1869_vm6, %v1846_v22  ;;  %2391 = vrcp.f32 %v3632_v16  ;;  %v1862_v9 = vpack.c.bf16 %v1798_v52, %v1798_v52  ;;  %v944_v61 = vsel %vm3612_vm11, %v943_v31, %v939_v17  ;;  %v1413_v63 = vsub.f32 1.0, %v1412_v42 }
 0x15d   :  { %v1662_v25 = vand.u32 2147483648, %v3622_v11  ;;  %v1751_v18 = vmul.f32 %v944_v61, %v3497_v57  ;;  %v1175_v62 = vadd.f32 %v2384_v32, %v1174_v14  ;;  %vm1417_vm5 = vweird.f32 %v2386_v45 }
 0x15e   :  { %vm1656_vm7 = vweird.f32 %v3622_v11  ;;  %v2390_v10 = vpop.eup %2389  ;;  %1927 = vst.msk [vmem:[%s4108_s3 + $0xe4] sm:$0xf] %vm1869_vm6, %v1862_v9  ;;  %v1414_v39 = vmul.f32 %v2386_v45, %v1413_v63  ;;  %v955_v47 = vand.u32 2147483647, %v3632_v16  ;;  %v957_v1 = vand.u32 2147483648, %v3632_v16  ;;  %vm1418_vm11 = vmor %vm1416_vm1, %vm1417_vm5 }
 0x15f   :  { %v3671_v57 = vadd.f32 1.0, %v2388_v0  ;;  %v1815_v59 = vpack.c.bf16 %v1751_v18, %v1751_v18  ;;  %v1179_v58 = vsel %vm1178_vm8, %v2384_v32, %v1175_v62  ;;  %v1652_v34 = vmul.f32 %v2390_v10, %v3622_v11 }
 0x160   :  { %vm3674_vm9 = vcmp.eq.f32.partialorder %v1660_v50, 8.507059e+37  ;;  %v1184_v35 = vsel %vm3634_vm0, %v1183_v36, %v1179_v58  ;;  %v1415_v55 = vadd.f32 %v2386_v45, %v1414_v39  ;;  %v1663_v2 = vor.u32 1.1754944e-38, %v1662_v25  ;;  %v477_v58 = vpop.f32.mrf.mxu2  ;;  %v517_v60 = vpop.f32.mrf.mxu3 }
 0x161   :  { %vm951_vm10 = vweird.f32 %v3632_v16  ;;  %v2149_v5 = vmul.f32 -1.442695, %v3606_v46  ;;  %1880 = vst.msk [vmem:[%s4108_s3 + $0x28] sm:$0xf] %vm1869_vm6, %v1815_v59  ;;  %v1767_v23 = vmul.f32 %v1184_v35, %v3526_v51  ;;  %v1653_v26 = vsub.f32 1.0, %v1652_v34  ;;  %v397_v14 = vpop.f32.mrf.mxu0 }
 0x162   :  { %v2392_v38 = vpop.eup %2391  ;;  %vm1657_vm12 = vweird.f32 %v2390_v10  ;;  %2393 = vrcp.f32 %v3671_v57  ;;  %v1419_v31 = vsel %vm1418_vm11, %v2386_v45, %v1415_v55  ;;  %vm3692_vm13 = vcmp.eq.f32.partialorder %v955_v47, 8.507059e+37  ;;  %v437_v47 = vpop.f32.mrf.mxu1 }
 0x163   :  { %v947_v33 = vmul.f32 %v2392_v38, %v3632_v16  ;;  %v958_v27 = vor.u32 1.1754944e-38, %v957_v1  ;;  %v1831_v24 = vpack.c.bf16 %v1767_v23, %v1767_v23  ;;  %v1424_v51 = vsel %vm3647_vm4, %v1423_v29, %v1419_v31  ;;  %vm1658_vm15 = vmor %vm1656_vm7, %vm1657_vm12 }
 0x164   :  { %v1654_v12 = vmul.f32 %v2390_v10, %v1653_v26  ;;  %vm952_vm14 = vweird.f32 %v2392_v38  ;;  %v1783_v21 = vmul.f32 %v1424_v51, %v3529_v54  ;;  %v1195_v15 = vand.u32 2147483647, %v3671_v57 }
 0x165   :  { %v948_v32 = vsub.f32 1.0, %v947_v33  ;;  %2395 = vpow2.f32 %v2149_v5  ;;  %1896 = vst.msk [vmem:[%s4108_s3 + $0x68] sm:$0xf] %vm1869_vm6, %v1831_v24  ;;  %v1197_v44 = vand.u32 2147483648, %v3671_v57  ;;  %v3711_v54 = vadd.f32 %v3708_v19, %v512_v49  ;;  %vm953_vm1 = vmor %vm951_vm10, %vm952_vm14 }
 0x166   :  { %v1655_v20 = vadd.f32 %v2390_v10, %v1654_v12  ;;  %v3714_v40 = vadd.f32 %v3708_v19, %v395_v56  ;;  %v1847_v45 = vpack.c.bf16 %v1783_v21, %v1783_v21  ;;  %v3720_v4 = vadd.f32 %v3708_v19, %v435_v37 }
 0x167   :  { %v949_v6 = vmul.f32 %v2392_v38, %v948_v32  ;;  %v3723_v36 = vadd.f32 %v3708_v19, %v475_v48  ;;  %v2165_v43 = vmul.f32 -1.442695, %v3711_v54  ;;  %v3728_v52 = vadd.f32 %v3708_v19, %v515_v13 }
 0x168   :  { %v2394_v22 = vpop.eup %2393  ;;  %v1659_v7 = vsel %vm1658_vm15, %v2390_v10, %v1655_v20  ;;  %v2118_v28 = vmul.f32 -1.442695, %v3714_v40  ;;  %1912 = vst.msk [vmem:[%s4108_s3 + $0xa8] sm:$0xf] %vm1869_vm6, %v1847_v45  ;;  %v2134_v49 = vmul.f32 -1.442695, %v3720_v4  ;;  %v3750_v62 = vadd.f32 %v3708_v19, %v397_v14 }
 0x169   :  { %v1664_v11 = vsel %vm3674_vm9, %v1663_v2, %v1659_v7  ;;  %v950_v42 = vadd.f32 %v2392_v38, %v949_v6  ;;  %v1187_v53 = vmul.f32 %v2394_v22, %v3671_v57  ;;  %vm1192_vm0 = vweird.f32 %v2394_v22 }
 0x16a   :  { %v1799_v29 = vmul.f32 %v1664_v11, %v3532_v8  ;;  %2397 = vpow2.f32 %v2165_v43  ;;  %v2150_v17 = vmul.f32 -1.442695, %v3723_v36  ;;  %v2166_v61 = vmul.f32 -1.442695, %v3728_v52 }
 0x16b   :  { %v2396_v50 = vpop.eup %2395  ;;  %v954_v0 = vsel %vm953_vm1, %v2392_v38, %v950_v42  ;;  %v1188_v9 = vsub.f32 1.0, %v1187_v53  ;;  %2399 = vpow2.f32 %v2118_v28  ;;  %vm1191_vm2 = vweird.f32 %v3671_v57  ;;  %v400_v42 = vpop.f32.mrf.mxu0 }
 0x16c   :  { %v1863_v63 = vpack.c.bf16 %v1799_v29, %v1799_v29  ;;  %v959_v8 = vsel %vm3692_vm13, %v958_v27, %v954_v0  ;;  %v3746_v25 = vadd.f32 1.0, %v2396_v50  ;;  %2401 = vpow2.f32 %v2134_v49  ;;  %vm1193_vm3 = vmor %vm1191_vm2, %vm1192_vm0 }
 0x16d   :  { %v1752_v16 = vmul.f32 %v959_v8, %v3542_v30  ;;  %v1189_v18 = vmul.f32 %v2394_v22, %v1188_v9  ;;  %2403 = vpow2.f32 %v2150_v17  ;;  %vm1196_vm4 = vcmp.eq.f32.partialorder %v1195_v15, 8.507059e+37  ;;  %v480_v9 = vpop.f32.mrf.mxu2 }
 0x16e   :  { %1928 = vst.msk [vmem:[%s4108_s3 + $0xe8] sm:$0xf] %vm1869_vm6, %v1863_v63  ;;  %2405 = vrcp.f32 %v3746_v25  ;;  %v1198_v30 = vor.u32 1.1754944e-38, %v1197_v44  ;;  %v1435_v59 = vand.u32 2147483647, %v3746_v25  ;;  %v1437_v56 = vand.u32 2147483648, %v3746_v25 }
 0x16f   :  { %v1816_v10 = vpack.c.bf16 %v1752_v16, %v1752_v16  ;;  %v1190_v39 = vadd.f32 %v2394_v22, %v1189_v18  ;;  %2407 = vpow2.f32 %v2166_v61  ;;  %v2119_v35 = vmul.f32 -1.442695, %v3750_v62 }
 0x170   :  { %v2398_v1 = vpop.eup %2397  ;;  %v3771_v38 = vadd.f32 %v3708_v19, %v437_v47  ;;  %v3776_v31 = vadd.f32 %v3708_v19, %v477_v58  ;;  %vm1431_vm5 = vweird.f32 %v3746_v25  ;;  %vm3781_vm7 = vcmp.eq.f32.partialorder %v1435_v59, 8.507059e+37 }
 0x171   :  { %v2400_v34 = vpop.eup %2399  ;;  %1881 = vst.msk [vmem:[%s4108_s3 + $0x2c] sm:$0xf] %vm1869_vm6, %v1816_v10  ;;  %v1194_v3 = vsel %vm1193_vm3, %v2394_v22, %v1190_v39  ;;  %v3765_v57 = vadd.f32 1.0, %v2398_v1  ;;  %v3800_v44 = vadd.f32 %v3708_v19, %v517_v60 }
 0x172   :  { %v2402_v55 = vpop.eup %2401  ;;  %v1199_v2 = vsel %vm1196_vm4, %v1198_v30, %v1194_v3  ;;  %v3768_v5 = vadd.f32 1.0, %v2400_v34  ;;  %v2135_v32 = vmul.f32 -1.442695, %v3771_v38  ;;  %v3797_v20 = vmul.f32 -1.442695, %v3776_v31 }
 0x173   :  { %v2404_v23 = vpop.eup %2403  ;;  %v1768_v26 = vmul.f32 %v1199_v2, %v3589_v41  ;;  %2409 = vrcp.f32 %v3765_v57  ;;  %v1438_v41 = vor.u32 1.1754944e-38, %v1437_v56  ;;  %v1675_v37 = vand.u32 2147483647, %v3765_v57 }
 0x174   :  { %v2406_v33 = vpop.eup %2405  ;;  %2411 = vrcp.f32 %v3768_v5  ;;  %v1677_v48 = vand.u32 2147483648, %v3765_v57  ;;  %v3787_v21 = vadd.f32 1.0, %v2402_v55  ;;  %v3794_v13 = vadd.f32 1.0, %v2404_v23 }
 0x175   :  { %v2408_v27 = vpop.eup %2407  ;;  %v1832_v24 = vpack.c.bf16 %v1768_v26, %v1768_v26  ;;  %v1427_v51 = vmul.f32 %v2406_v33, %v3746_v25  ;;  %2413 = vpow2.f32 %v2119_v35  ;;  %vm1671_vm8 = vweird.f32 %v3765_v57 }
 0x176   :  { %v970_v45 = vand.u32 2147483647, %v3768_v5  ;;  %v972_v6 = vand.u32 2147483648, %v3768_v5  ;;  %2415 = vrcp.f32 %v3787_v21  ;;  %v3806_v22 = vadd.f32 1.0, %v2408_v27 }
 0x177   :  { %1897 = vst.msk [vmem:[%s4108_s3 + $0x6c] sm:$0xf] %vm1869_vm6, %v1832_v24  ;;  %v1428_v15 = vsub.f32 1.0, %v1427_v51  ;;  %vm1432_vm9 = vweird.f32 %v2406_v33  ;;  %vm966_vm10 = vweird.f32 %v3768_v5  ;;  %2417 = vrcp.f32 %v3794_v13 }
 0x178   :  { %vm3811_vm11 = vcmp.eq.f32.partialorder %v1675_v37, 8.507059e+37  ;;  %v1678_v53 = vor.u32 1.1754944e-38, %v1677_v48  ;;  %2419 = vpow2.f32 %v2135_v32  ;;  %v1210_v14 = vand.u32 2147483647, %v3787_v21  ;;  %vm1433_vm12 = vmor %vm1431_vm5, %vm1432_vm9 }
 0x179   :  { %v2410_v7 = vpop.eup %2409  ;;  %v1429_v43 = vmul.f32 %v2406_v33, %v1428_v15  ;;  %v1212_v50 = vand.u32 2147483648, %v3787_v21  ;;  %vm3820_vm13 = vcmp.eq.f32.partialorder %v970_v45, 8.507059e+37  ;;  %v973_v61 = vor.u32 1.1754944e-38, %v972_v6 }
 0x17a   :  { %v2412_v28 = vpop.eup %2411  ;;  %v1667_v11 = vmul.f32 %v2410_v7, %v3765_v57  ;;  %2421 = vrcp.f32 %v3806_v22  ;;  %vm1672_vm14 = vweird.f32 %v2410_v7  ;;  %vm1206_vm15 = vweird.f32 %v3787_v21 }
 0x17b   :  { %v2414_v29 = vpop.eup %2413  ;;  %v1430_v49 = vadd.f32 %v2406_v33, %v1429_v43  ;;  %v962_v17 = vmul.f32 %v2412_v28, %v3768_v5  ;;  %vm967_vm0 = vweird.f32 %v2412_v28  ;;  %vm1446_vm1 = vweird.f32 %v3794_v13  ;;  %vm1673_vm3 = vmor %vm1671_vm8, %vm1672_vm14 }
 0x17c   :  { %v1668_v0 = vsub.f32 1.0, %v1667_v11  ;;  %v2416_v16 = vpop.eup %2415  ;;  %v1450_v25 = vand.u32 2147483647, %v3794_v13  ;;  %vm3832_vm2 = vcmp.eq.f32.partialorder %v1210_v14, 8.507059e+37  ;;  %v1213_v58 = vor.u32 1.1754944e-38, %v1212_v50  ;;  %vm968_vm5 = vmor %vm966_vm10, %vm967_vm0 }
 0x17d   :  { %v1434_v63 = vsel %vm1433_vm12, %v2406_v33, %v1430_v49  ;;  %v963_v8 = vsub.f32 1.0, %v962_v17  ;;  %v2418_v39 = vpop.eup %2417  ;;  %v1202_v30 = vmul.f32 %v2416_v16, %v3787_v21  ;;  %v1452_v35 = vand.u32 2147483648, %v3794_v13 }
 0x17e   :  { %v1439_v18 = vsel %vm3781_vm7, %v1438_v41, %v1434_v63  ;;  %v1669_v10 = vmul.f32 %v2410_v7, %v1668_v0  ;;  %v2420_v34 = vpop.eup %2419  ;;  %v1442_v56 = vmul.f32 %v2418_v39, %v3794_v13  ;;  %v1690_v55 = vand.u32 2147483647, %v3806_v22  ;;  %v440_v0 = vpop.f32.mrf.mxu1 }
 0x17f   :  { %v1784_v47 = vmul.f32 %v1439_v18, %v3606_v46  ;;  %v964_v1 = vmul.f32 %v2412_v28, %v963_v8  ;;  %v1203_v23 = vsub.f32 1.0, %v1202_v30  ;;  %vm1207_vm4 = vweird.f32 %v2416_v16 }
 0x180   :  { %v1670_v3 = vadd.f32 %v2410_v7, %v1669_v10  ;;  %v2422_v26 = vpop.eup %2421  ;;  %v1443_v60 = vsub.f32 1.0, %v1442_v56  ;;  %vm1447_vm7 = vweird.f32 %v2418_v39  ;;  %v3845_v27 = vadd.f32 1.0, %v2414_v29  ;;  %vm1208_vm8 = vmor %vm1206_vm15, %vm1207_vm4 }
 0x181   :  { %v1848_v2 = vpack.c.bf16 %v1784_v47, %v1784_v47  ;;  %v965_v46 = vadd.f32 %v2412_v28, %v964_v1  ;;  %v1204_v51 = vmul.f32 %v2416_v16, %v1203_v23  ;;  %v1682_v12 = vmul.f32 %v2422_v26, %v3806_v22  ;;  %vm1448_vm9 = vmor %vm1446_vm1, %vm1447_vm7 }
 0x182   :  { %v1674_v33 = vsel %vm1673_vm3, %v2410_v7, %v1670_v3  ;;  %v1444_v37 = vmul.f32 %v2418_v39, %v1443_v60  ;;  %v3857_v48 = vadd.f32 1.0, %v2420_v34  ;;  %2423 = vrcp.f32 %v3845_v27 }
 0x183   :  { %1913 = vst.msk [vmem:[%s4108_s3 + $0xac] sm:$0xf] %vm1869_vm6, %v1848_v2  ;;  %v1679_v57 = vsel %vm3811_vm11, %v1678_v53, %v1674_v33  ;;  %v969_v24 = vsel %vm968_vm5, %v2412_v28, %v965_v46  ;;  %v1205_v15 = vadd.f32 %v2416_v16, %v1204_v51  ;;  %v1683_v45 = vsub.f32 1.0, %v1682_v12 }
 0x184   :  { %v1800_v41 = vmul.f32 %v1679_v57, %v3711_v54  ;;  %v974_v5 = vsel %vm3820_vm13, %v973_v61, %v969_v24  ;;  %v1445_v7 = vadd.f32 %v2418_v39, %v1444_v37  ;;  %v1453_v43 = vor.u32 1.1754944e-38, %v1452_v35 }
 0x185   :  { %v1753_v32 = vmul.f32 %v974_v5, %v3714_v40  ;;  %v1692_v54 = vand.u32 2147483648, %v3806_v22  ;;  %v1209_v11 = vsel %vm1208_vm8, %v2416_v16, %v1205_v15  ;;  %v1684_v40 = vmul.f32 %v2422_v26, %v1683_v45 }
 0x186   :  { %v1864_v6 = vpack.c.bf16 %v1800_v41, %v1800_v41  ;;  %vm1687_vm10 = vweird.f32 %v2422_v26  ;;  %v1214_v21 = vsel %vm3832_vm2, %v1213_v58, %v1209_v11  ;;  %v1449_v53 = vsel %vm1448_vm9, %v2418_v39, %v1445_v7  ;;  %v442_v37 = vpop.f32.mrf.mxu1 }
 0x187   :  { %v1817_v28 = vpack.c.bf16 %v1753_v32, %v1753_v32  ;;  %vm1451_vm11 = vcmp.eq.f32.partialorder %v1450_v25, 8.507059e+37  ;;  %2425 = vrcp.f32 %v3857_v48  ;;  %v1769_v13 = vmul.f32 %v1214_v21, %v3720_v4  ;;  %v482_v32 = vpop.f32.mrf.mxu2 }
 0x188   :  { %1929 = vst.msk [vmem:[%s4108_s3 + $0xec] sm:$0xf] %vm1869_vm6, %v1864_v6  ;;  %v1454_v29 = vsel %vm1451_vm11, %v1453_v43, %v1449_v53  ;;  %v1685_v49 = vadd.f32 %v2422_v26, %v1684_v40  ;;  %vm1686_vm12 = vweird.f32 %v3806_v22  ;;  %vm1691_vm14 = vcmp.eq.f32.partialorder %v1690_v55, 8.507059e+37  ;;  %v2424_v61 = vpop.eup %2423 }
 0x189   :  { %1882 = vst.msk [vmem:[%s4108_s3 + $0x30] sm:$0xf] %vm1869_vm6, %v1817_v28  ;;  %v1785_v17 = vmul.f32 %v1454_v29, %v3723_v36  ;;  %vm1688_vm13 = vmor %vm1686_vm12, %vm1687_vm10  ;;  %v1693_v14 = vor.u32 1.1754944e-38, %v1692_v54  ;;  %v985_v50 = vand.u32 2147483647, %v3845_v27  ;;  %v1833_v63 = vpack.c.bf16 %v1769_v13, %v1769_v13 }
 0x18a   :  { %v1689_v8 = vsel %vm1688_vm13, %v2422_v26, %v1685_v49  ;;  %2427 = vpow2.f32 %v3797_v20  ;;  %v2167_v4 = vmul.f32 -1.442695, %v3800_v44  ;;  %v977_v22 = vmul.f32 %v2424_v61, %v3845_v27  ;;  %v402_v26 = vpop.f32.mrf.mxu0 }
 0x18b   :  { %v1849_v16 = vpack.c.bf16 %v1785_v17, %v1785_v17  ;;  %v1694_v18 = vsel %vm1691_vm14, %v1693_v14, %v1689_v8  ;;  %1898 = vst.msk [vmem:[%s4108_s3 + $0x70] sm:$0xf] %vm1869_vm6, %v1833_v63  ;;  %vm981_vm15 = vweird.f32 %v3845_v27  ;;  %v3897_v25 = vadd.f32 %v3708_v19, %v400_v42 }
 0x18c   :  { %v1801_v36 = vmul.f32 %v1694_v18, %v3728_v52  ;;  %2429 = vpow2.f32 %v2167_v4  ;;  %v978_v20 = vsub.f32 1.0, %v977_v22  ;;  %v3900_v39 = vadd.f32 %v3708_v19, %v440_v0  ;;  %v520_v52 = vpop.f32.mrf.mxu3 }
 0x18d   :  { %v2426_v10 = vpop.eup %2425  ;;  %1914 = vst.msk [vmem:[%s4108_s3 + $0xb0] sm:$0xf] %vm1869_vm6, %v1849_v16  ;;  %v3903_v47 = vadd.f32 %v3708_v19, %v480_v9  ;;  %vm3905_vm0 = vcmp.eq.f32.partialorder %v985_v50, 8.507059e+37  ;;  %v987_v59 = vand.u32 2147483648, %v3845_v27  ;;  %vm982_vm1 = vweird.f32 %v2424_v61 }
 0x18e   :  { %v1865_v1 = vpack.c.bf16 %v1801_v36, %v1801_v36  ;;  %v1217_v58 = vmul.f32 %v2426_v10, %v3857_v48  ;;  %v979_v34 = vmul.f32 %v2424_v61, %v978_v20  ;;  %v2120_v3 = vmul.f32 -1.442695, %v3897_v25  ;;  %vm983_vm2 = vmor %vm981_vm15, %vm982_vm1 }
 0x18f   :  { %v2136_v56 = vmul.f32 -1.442695, %v3900_v39  ;;  %v1225_v2 = vand.u32 2147483647, %v3857_v48  ;;  %v1227_v46 = vand.u32 2147483648, %v3857_v48  ;;  %v3920_v23 = vadd.f32 %v3708_v19, %v520_v52 }
 0x190   :  { %v2428_v35 = vpop.eup %2427  ;;  %1930 = vst.msk [vmem:[%s4108_s3 + $0xf0] sm:$0xf] %vm1869_vm6, %v1865_v1  ;;  %v1218_v55 = vsub.f32 1.0, %v1217_v58  ;;  %v980_v33 = vadd.f32 %v2424_v61, %v979_v34  ;;  %2431 = vpow2.f32 %v2120_v3  ;;  %v2152_v57 = vmul.f32 -1.442695, %v3903_v47 }
 0x191   :  { %v3922_v60 = vadd.f32 1.0, %v2428_v35  ;;  %v988_v51 = vor.u32 1.1754944e-38, %v987_v59  ;;  %vm1222_vm3 = vweird.f32 %v2426_v10  ;;  %2433 = vpow2.f32 %v2136_v56 }
 0x192   :  { %v2430_v24 = vpop.eup %2429  ;;  %v1219_v12 = vmul.f32 %v2426_v10, %v1218_v55  ;;  %v984_v41 = vsel %vm983_vm2, %v2424_v61, %v980_v33  ;;  %vm1221_vm4 = vweird.f32 %v3857_v48  ;;  %v3931_v5 = vadd.f32 %v3708_v19, %v402_v26 }
 0x193   :  { %2435 = vrcp.f32 %v3922_v60  ;;  %v989_v15 = vsel %vm3905_vm0, %v988_v51, %v984_v41  ;;  %v3935_v27 = vadd.f32 1.0, %v2430_v24  ;;  %v2168_v6 = vmul.f32 -1.442695, %v3920_v23  ;;  %vm1223_vm5 = vmor %vm1221_vm4, %vm1222_vm3 }
 0x194   :  { %v1220_v45 = vadd.f32 %v2426_v10, %v1219_v12  ;;  %v1754_v7 = vmul.f32 %v989_v15, %v3750_v62  ;;  %vm1226_vm7 = vcmp.eq.f32.partialorder %v1225_v2, 8.507059e+37  ;;  %v1228_v48 = vor.u32 1.1754944e-38, %v1227_v46  ;;  %v522_v61 = vpop.f32.mrf.mxu3 }
 0x195   :  { %2437 = vpow2.f32 %v2152_v57  ;;  %v3941_v54 = vadd.f32 %v3708_v19, %v442_v37  ;;  %v3944_v28 = vadd.f32 %v3708_v19, %v482_v32  ;;  %v1465_v21 = vand.u32 2147483647, %v3922_v60 }
 0x196   :  { %v1224_v43 = vsel %vm1223_vm5, %v2426_v10, %v1220_v45  ;;  %2439 = vrcp.f32 %v3935_v27  ;;  %v2432_v11 = vpop.eup %2431  ;;  %v1818_v40 = vpack.c.bf16 %v1754_v7, %v1754_v7  ;;  %v2121_v62 = vmul.f32 -1.442695, %v3931_v5 }
 0x197   :  { %v1229_v42 = vsel %vm1226_vm7, %v1228_v48, %v1224_v43  ;;  %v2434_v53 = vpop.eup %2433  ;;  %v1467_v29 = vand.u32 2147483648, %v3922_v60  ;;  %v3950_v49 = vadd.f32 1.0, %v2432_v11  ;;  %2441 = vpow2.f32 %v2168_v6 }
 0x198   :  { %v1770_v13 = vmul.f32 %v1229_v42, %v3771_v38  ;;  %1883 = vst.msk [vmem:[%s4108_s3 + $0x34] sm:$0xf] %vm1869_vm6, %v1818_v40  ;;  %v1705_v14 = vand.u32 2147483647, %v3935_v27  ;;  %v3957_v50 = vadd.f32 1.0, %v2434_v53  ;;  %vm1461_vm8 = vweird.f32 %v3922_v60 }
 0x199   :  { %v2436_v17 = vpop.eup %2435  ;;  %2443 = vrcp.f32 %v3950_v49  ;;  %v2137_v38 = vmul.f32 -1.442695, %v3941_v54  ;;  %vm3963_vm9 = vcmp.eq.f32.partialorder %v1465_v21, 8.507059e+37  ;;  %v1707_v4 = vand.u32 2147483648, %v3935_v27 }
 0x19a   :  { %v1834_v0 = vpack.c.bf16 %v1770_v13, %v1770_v13  ;;  %v1457_v9 = vmul.f32 %v2436_v17, %v3922_v60  ;;  %2445 = vrcp.f32 %v3957_v50  ;;  %v1468_v22 = vor.u32 1.1754944e-38, %v1467_v29 }
 0x19b   :  { %v2438_v63 = vpop.eup %2437  ;;  %vm1701_vm10 = vweird.f32 %v3935_v27  ;;  %v3975_v36 = vmul.f32 -1.442695, %v3944_v28  ;;  %vm3978_vm11 = vcmp.eq.f32.partialorder %v1705_v14, 8.507059e+37  ;;  %2447 = vpow2.f32 %v2121_v62 }
 0x19c   :  { %v2440_v16 = vpop.eup %2439  ;;  %1899 = vst.msk [vmem:[%s4108_s3 + $0x74] sm:$0xf] %vm1869_vm6, %v1834_v0  ;;  %v1458_v18 = vsub.f32 1.0, %v1457_v9  ;;  %v3983_v52 = vadd.f32 %v3708_v19, %v522_v61  ;;  %vm1462_vm12 = vweird.f32 %v2436_v17  ;;  %v1000_v59 = vand.u32 2147483647, %v3950_v49 }
 0x19d   :  { %v1697_v10 = vmul.f32 %v2440_v16, %v3935_v27  ;;  %v2442_v1 = vpop.eup %2441  ;;  %v3986_v58 = vadd.f32 1.0, %v2438_v63  ;;  %v1708_v3 = vor.u32 1.1754944e-38, %v1707_v4  ;;  %vm996_vm13 = vweird.f32 %v3950_v49  ;;  %vm1463_vm15 = vmor %vm1461_vm8, %vm1462_vm12 }
 0x19e   :  { %v1459_v30 = vmul.f32 %v2436_v17, %v1458_v18  ;;  %v1002_v56 = vand.u32 2147483648, %v3950_v49  ;;  %vm1236_vm14 = vweird.f32 %v3957_v50  ;;  %v3992_v19 = vadd.f32 1.0, %v2442_v1 }
 0x19f   :  { %v1698_v34 = vsub.f32 1.0, %v1697_v10  ;;  %v2444_v35 = vpop.eup %2443  ;;  %2449 = vrcp.f32 %v3986_v58  ;;  %vm1702_vm0 = vweird.f32 %v2440_v16  ;;  %v1240_v33 = vand.u32 2147483647, %v3957_v50 }
 0x1a0   :  { %v1460_v55 = vadd.f32 %v2436_v17, %v1459_v30  ;;  %v2446_v2 = vpop.eup %2445  ;;  %v992_v26 = vmul.f32 %v2444_v35, %v3950_v49  ;;  %vm3998_vm1 = vcmp.eq.f32.partialorder %v1000_v59, 8.507059e+37  ;;  %v1242_v12 = vand.u32 2147483648, %v3957_v50  ;;  %vm1703_vm2 = vmor %vm1701_vm10, %vm1702_vm0 }
 0x1a1   :  { %v1699_v46 = vmul.f32 %v2440_v16, %v1698_v34  ;;  %v1232_v51 = vmul.f32 %v2446_v2, %v3957_v50  ;;  %v2448_v41 = vpop.eup %2447  ;;  %2451 = vpow2.f32 %v2137_v38  ;;  %v1003_v45 = vor.u32 1.1754944e-38, %v1002_v56 }
 0x1a2   :  { %v1464_v57 = vsel %vm1463_vm15, %v2436_v17, %v1460_v55  ;;  %v993_v32 = vsub.f32 1.0, %v992_v26  ;;  %2453 = vrcp.f32 %v3992_v19  ;;  %vm997_vm3 = vweird.f32 %v2444_v35 }
 0x1a3   :  { %v1469_v60 = vsel %vm3963_vm9, %v1468_v22, %v1464_v57  ;;  %v1700_v37 = vadd.f32 %v2440_v16, %v1699_v46  ;;  %v1233_v6 = vsub.f32 1.0, %v1232_v51  ;;  %vm1237_vm4 = vweird.f32 %v2446_v2  ;;  %vm998_vm7 = vmor %vm996_vm13, %vm997_vm3 }
 0x1a4   :  { %v1786_v15 = vmul.f32 %v1469_v60, %v3776_v31  ;;  %v994_v48 = vmul.f32 %v2444_v35, %v993_v32  ;;  %v4012_v21 = vadd.f32 1.0, %v2448_v41  ;;  %vm4015_vm5 = vcmp.eq.f32.partialorder %v1240_v33, 8.507059e+37  ;;  %vm1238_vm8 = vmor %vm1236_vm14, %vm1237_vm4 }
 0x1a5   :  { %v1704_v7 = vsel %vm1703_vm2, %v2440_v16, %v1700_v37  ;;  %v2450_v43 = vpop.eup %2449  ;;  %v1234_v42 = vmul.f32 %v2446_v2, %v1233_v6  ;;  %v1243_v29 = vor.u32 1.1754944e-38, %v1242_v12  ;;  %v1480_v17 = vand.u32 2147483647, %v3986_v58 }
 0x1a6   :  { %v1850_v11 = vpack.c.bf16 %v1786_v15, %v1786_v15  ;;  %v1709_v40 = vsel %vm3978_vm11, %v1708_v3, %v1704_v7  ;;  %v995_v27 = vadd.f32 %v2444_v35, %v994_v48  ;;  %v1472_v53 = vmul.f32 %v2450_v43, %v3986_v58 }
 0x1a7   :  { %v1802_v31 = vmul.f32 %v1709_v40, %v3800_v44  ;;  %v1235_v13 = vadd.f32 %v2446_v2, %v1234_v42  ;;  %2455 = vrcp.f32 %v4012_v21  ;;  %v2452_v44 = vpop.eup %2451  ;;  %v2169_v38 = vmul.f32 -1.442695, %v3983_v52 }
 0x1a8   :  { %1915 = vst.msk [vmem:[%s4108_s3 + $0xb4] sm:$0xf] %vm1869_vm6, %v1850_v11  ;;  %v999_v0 = vsel %vm998_vm7, %v2444_v35, %v995_v27  ;;  %v1473_v9 = vsub.f32 1.0, %v1472_v53  ;;  %v2454_v61 = vpop.eup %2453  ;;  %vm1477_vm9 = vweird.f32 %v2450_v43  ;;  %v1482_v8 = vand.u32 2147483648, %v3986_v58 }
 0x1a9   :  { %v1866_v14 = vpack.c.bf16 %v1802_v31, %v1802_v31  ;;  %v1004_v49 = vsel %vm3998_vm1, %v1003_v45, %v999_v0  ;;  %v1239_v63 = vsel %vm1238_vm8, %v2446_v2, %v1235_v13  ;;  %v1712_v18 = vmul.f32 %v2454_v61, %v3992_v19 }
 0x1aa   :  { %v1755_v4 = vmul.f32 %v1004_v49, %v3897_v25  ;;  %v1244_v50 = vsel %vm4015_vm5, %v1243_v29, %v1239_v63  ;;  %v1474_v16 = vmul.f32 %v2450_v43, %v1473_v9  ;;  %vm1476_vm10 = vweird.f32 %v3986_v58 }
 0x1ab   :  { %1931 = vst.msk [vmem:[%s4108_s3 + $0xf4] sm:$0xf] %vm1869_vm6, %v1866_v14  ;;  %v1771_v22 = vmul.f32 %v1244_v50, %v3900_v39  ;;  %vm4045_vm11 = vcmp.eq.f32.partialorder %v1480_v17, 8.507059e+37  ;;  %v1720_v20 = vand.u32 2147483647, %v3992_v19  ;;  %v1713_v59 = vsub.f32 1.0, %v1712_v18  ;;  %vm1478_vm12 = vmor %vm1476_vm10, %vm1477_vm9 }
 0x1ac   :  { %v1819_v1 = vpack.c.bf16 %v1755_v4, %v1755_v4  ;;  %v1475_v30 = vadd.f32 %v2450_v43, %v1474_v16  ;;  %v4050_v25 = vadd.f32 1.0, %v2452_v44  ;;  %v1483_v56 = vor.u32 1.1754944e-38, %v1482_v8 }
 0x1ad   :  { %v2456_v34 = vpop.eup %2455  ;;  %v1835_v3 = vpack.c.bf16 %v1771_v22, %v1771_v22  ;;  %v1722_v39 = vand.u32 2147483648, %v3992_v19  ;;  %2457 = vpow2.f32 %v3975_v36  ;;  %v1714_v35 = vmul.f32 %v2454_v61, %v1713_v59 }
 0x1ae   :  { %1884 = vst.msk [vmem:[%s4108_s3 + $0x38] sm:$0xf] %vm1869_vm6, %v1819_v1  ;;  %v1479_v58 = vsel %vm1478_vm12, %v2450_v43, %v1475_v30  ;;  %vm1717_vm13 = vweird.f32 %v2454_v61  ;;  %v1007_v55 = vmul.f32 %v2456_v34, %v4012_v21  ;;  %vm1716_vm14 = vweird.f32 %v3992_v19 }
 0x1af   :  { %1900 = vst.msk [vmem:[%s4108_s3 + $0x78] sm:$0xf] %vm1869_vm6, %v1835_v3  ;;  %v1484_v2 = vsel %vm4045_vm11, %v1483_v56, %v1479_v58  ;;  %2459 = vrcp.f32 %v4050_v25  ;;  %v1715_v46 = vadd.f32 %v2454_v61, %v1714_v35  ;;  %vm1721_vm15 = vcmp.eq.f32.partialorder %v1720_v20, 8.507059e+37  ;;  %vm1718_vm0 = vmor %vm1716_vm14, %vm1717_vm13 }
 0x1b0   :  { %v1787_v36 = vmul.f32 %v1484_v2, %v3903_v47  ;;  %v1008_v26 = vsub.f32 1.0, %v1007_v55  ;;  %v1723_v33 = vor.u32 1.1754944e-38, %v1722_v39  ;;  %v1015_v57 = vand.u32 2147483647, %v4012_v21 }
 0x1b1   :  { %v1017_v24 = vand.u32 2147483648, %v4012_v21  ;;  %2461 = vpow2.f32 %v2169_v38  ;;  %v1719_v12 = vsel %vm1718_vm0, %v2454_v61, %v1715_v46  ;;  %vm1012_vm1 = vweird.f32 %v2456_v34 }
 0x1b2   :  { %v1851_v51 = vpack.c.bf16 %v1787_v36, %v1787_v36  ;;  %v1009_v41 = vmul.f32 %v2456_v34, %v1008_v26  ;;  %v1724_v19 = vsel %vm1721_vm15, %v1723_v33, %v1719_v12  ;;  %vm1011_vm2 = vweird.f32 %v4012_v21 }
 0x1b3   :  { %v2458_v60 = vpop.eup %2457  ;;  %v1803_v47 = vmul.f32 %v1724_v19, %v3920_v23  ;;  %vm1013_vm3 = vmor %vm1011_vm2, %vm1012_vm1  ;;  %v1018_v45 = vor.u32 1.1754944e-38, %v1017_v24  ;;  %vm1016_vm4 = vcmp.eq.f32.partialorder %v1015_v57, 8.507059e+37  ;;  %v1255_v21 = vand.u32 2147483647, %v4050_v25 }
 0x1b4   :  { %1916 = vst.msk [vmem:[%s4108_s3 + $0xb8] sm:$0xf] %vm1869_vm6, %v1851_v51  ;;  %v1010_v37 = vadd.f32 %v2456_v34, %v1009_v41  ;;  %v764_v32 = vadd.f32 1.0, %v2458_v60  ;;  %v1257_v31 = vand.u32 2147483648, %v4050_v25  ;;  %vm1251_vm7 = vweird.f32 %v4050_v25 }
 0x1b5   :  { %v2460_v15 = vpop.eup %2459  ;;  %v1867_v6 = vpack.c.bf16 %v1803_v47, %v1803_v47  ;;  %vm1256_vm9 = vcmp.eq.f32.partialorder %v1255_v21, 8.507059e+37 }
 0x1b6   :  { %v1014_v7 = vsel %vm1013_vm3, %v2456_v34, %v1010_v37  ;;  %v1247_v48 = vmul.f32 %v2460_v15, %v4050_v25  ;;  %2463 = vrcp.f32 %v764_v32  ;;  %vm1252_vm5 = vweird.f32 %v2460_v15 }
 0x1b7   :  { %v2462_v43 = vpop.eup %2461  ;;  %v1019_v11 = vsel %vm1016_vm4, %v1018_v45, %v1014_v7  ;;  %1932 = vst.msk [vmem:[%s4108_s3 + $0xf8] sm:$0xf] %vm1869_vm6, %v1867_v6  ;;  %vm1253_vm8 = vmor %vm1251_vm7, %vm1252_vm5  ;;  %v1497_v38 = vand.u32 2147483648, %v764_v32  ;;  %v1495_v8 = vand.u32 2147483647, %v764_v32  ;;  %vm1491_vm11 = vweird.f32 %v764_v32 }
 0x1b8   :  { %v1756_v23 = vmul.f32 %v1019_v11, %v3931_v5  ;;  %v1248_v40 = vsub.f32 1.0, %v1247_v48  ;;  %v780_v42 = vadd.f32 1.0, %v2462_v43  ;;  %v1258_v5 = vor.u32 1.1754944e-38, %v1257_v31 }
 0x1b9   :  { %v1498_v18 = vor.u32 1.1754944e-38, %v1497_v38  ;;  %vm1496_vm14 = vcmp.eq.f32.partialorder %v1495_v8, 8.507059e+37 }
 0x1ba   :  { %v1820_v27 = vpack.c.bf16 %v1756_v23, %v1756_v23  ;;  %v1249_v62 = vmul.f32 %v2460_v15, %v1248_v40  ;;  %2465 = vrcp.f32 %v780_v42  ;;  %v1737_v16 = vand.u32 2147483648, %v780_v42 }
 0x1bb   :  { %vm1731_vm15 = vweird.f32 %v780_v42 }
 0x1bc   :  { %1885 = vst.msk [vmem:[%s4108_s3 + $0x3c] sm:$0xf] %vm1869_vm6, %v1820_v27  ;;  %v1250_v53 = vadd.f32 %v2460_v15, %v1249_v62  ;;  %v2464_v13 = vpop.eup %2463  ;;  %v1738_v59 = vor.u32 1.1754944e-38, %v1737_v16 }
 0x1bd   :  { %v1487_v17 = vmul.f32 %v2464_v13, %v764_v32  ;;  %vm1492_vm10 = vweird.f32 %v2464_v13 }
 0x1be   :  { %v1254_v29 = vsel %vm1253_vm8, %v2460_v15, %v1250_v53  ;;  %vm1493_vm12 = vmor %vm1491_vm11, %vm1492_vm10 }
 0x1bf   :  { %v1259_v44 = vsel %vm1256_vm9, %v1258_v5, %v1254_v29  ;;  %v1488_v9 = vsub.f32 1.0, %v1487_v17 }
 0x1c0   :  { %v2466_v14 = vpop.eup %2465  ;;  %v1772_v0 = vmul.f32 %v1259_v44, %v3941_v54  ;;  %v1735_v54 = vand.u32 2147483647, %v780_v42 }
 0x1c1   :  { %v1727_v61 = vmul.f32 %v2466_v14, %v780_v42  ;;  %v1489_v63 = vmul.f32 %v2464_v13, %v1488_v9  ;;  %vm1732_vm13 = vweird.f32 %v2466_v14 }
 0x1c2   :  { %v1836_v49 = vpack.c.bf16 %v1772_v0, %v1772_v0  ;;  %vm1733_vm0 = vmor %vm1731_vm15, %vm1732_vm13  ;;  %vm1736_vm1 = vcmp.eq.f32.partialorder %v1735_v54, 8.507059e+37 }
 0x1c3   :  { %v1728_v4 = vsub.f32 1.0, %v1727_v61  ;;  %v1490_v50 = vadd.f32 %v2464_v13, %v1489_v63 }
 0x1c4   :  { %1901 = vst.msk [vmem:[%s4108_s3 + $0x7c] sm:$0xf] %vm1869_vm6, %v1836_v49 }
 0x1c5   :  { %v1729_v22 = vmul.f32 %v2466_v14, %v1728_v4  ;;  %v1494_v10 = vsel %vm1493_vm12, %v2464_v13, %v1490_v50 }
 0x1c6   :  { %v1499_v20 = vsel %vm1496_vm14, %v1498_v18, %v1494_v10 }
 0x1c7   :  { %v1730_v1 = vadd.f32 %v2466_v14, %v1729_v22  ;;  %v1788_v30 = vmul.f32 %v1499_v20, %v3944_v28 }
 0x1c9   :  { %v1734_v25 = vsel %vm1733_vm0, %v2466_v14, %v1730_v1  ;;  %v1852_v34 = vpack.c.bf16 %v1788_v30, %v1788_v30 }
 0x1ca   :  { %v1739_v3 = vsel %vm1736_vm1, %v1738_v59, %v1734_v25 }
 0x1cb   :  { %v1804_v56 = vmul.f32 %v1739_v3, %v3983_v52  ;;  %1917 = vst.msk [vmem:[%s4108_s3 + $0xbc] sm:$0xf] %vm1869_vm6, %v1852_v34 }
 0x1cd   :  { %v1868_v39 = vpack.c.bf16 %v1804_v56, %v1804_v56 }
 0x1cf   :  { %1933 = vst.msk [vmem:[%s4108_s3 + $0xfc] sm:$0xf] %vm1869_vm6, %v1868_v39 }

</bundles_post_ra>
